<compile_context>
chip_gen: v7x
topology: tpu7x:2x2x1
jax: 0.10.0
libtpu: 0.0.40
codegen_flags: <defaults>
</compile_context>

<pallas_src>
import functools

import jax
import jax.numpy as jnp
import numpy as np
from jax.experimental import pallas as pl
from jax.experimental.pallas import tpu as pltpu


def _convgru_kernel(x_ref, wzr_ref, wq_ref, bzr_ref, bq_ref,
                    o_ref, h_ref, pad_ref, *, H, W, Cin, HID):
    CT = HID + Cin
    Wp = W + 2
    WH = W * HID                  # lane width of the hidden-state / output tile
    h_lane0 = HID                 # interior (padded pixel 1) start of the h-channel block
    x_lane0 = Wp * HID + Cin      # interior start of the x-channel block

    t = pl.program_id(1)

    @pl.when(t == 0)
    def _init():
        # Reset the recurrence for this batch element.  The padded scratch is zeroed
        # only here: its 1-pixel spatial border stays zero forever and the interior is
        # fully overwritten every timestep (no per-call zero fill).
        h_ref[...] = jnp.zeros_like(h_ref)
        pad_ref[...] = jnp.zeros_like(pad_ref)

    x_t = x_ref[0, 0]             # (H, W*Cin)  lane-dense input tile
    h = h_ref[...]                # (H, W*HID)  lane-dense hidden state

    # Scatter the current h and x into the channel-blocked padded row buffer:
    #   pad[yp, xp*HID + c]          = h[yp-1, xp-1, c]
    #   pad[yp, Wp*HID + xp*Cin + c] = x[yp-1, xp-1, c]
    # Both are single full-width stores (no concatenate, no reshape).
    pad_ref[1:H + 1, h_lane0:h_lane0 + WH] = h
    pad_ref[1:H + 1, x_lane0:x_lane0 + W * Cin] = x_t

    def band_rows():
        # Stack the three ky-shifted padded row windows along lanes -> (H, 3*Wp*CT).
        return jnp.concatenate([pad_ref[ky:ky + H, :] for ky in range(3)], axis=-1)

    # Fused z/r gates: one banded-weight MXU matmul (K = 3*Wp*CT, N = 2*W*HID).
    zr = jax.nn.sigmoid(
        jnp.dot(band_rows(), wzr_ref[...], preferred_element_type=jnp.float32)
        + bzr_ref[...])
    z = zr[:, :WH]
    r = zr[:, WH:]

    # q gate: only the h-channel lanes change (r*h); the x-channel lanes are reused.
    pad_ref[1:H + 1, h_lane0:h_lane0 + WH] = r * h
    q = jnp.tanh(
        jnp.dot(band_rows(), wq_ref[...], preferred_element_type=jnp.float32)
        + bq_ref[...])

    # Gate math stays f32 on the VPU (v5e has no bf16 VPU path).
    h_new = (1.0 - z) * h + z * q
    h_ref[...] = h_new
    o_ref[0, 0] = h_new.astype(o_ref.dtype)      # full-width lane-dense store


def _band_weight(w_oihw, hid, cin, W):
    """Banded matrix for a 3x3 'SAME' conv over cat([h, x], channel) inputs laid out as
    channel-blocked padded rows.

    Row index:  ky*Wp*CT + xp*hid + c             (hidden channel c at padded pixel xp)
                ky*Wp*CT + Wp*hid + xp*cin + c    (input  channel c at padded pixel xp)
    Col index:  x*out + o
    """
    out = w_oihw.shape[0]
    ct = hid + cin
    wp = W + 2
    w = jnp.transpose(w_oihw, (2, 3, 1, 0)).astype(jnp.float32)   # [ky, kx, i, o]
    w_h, w_x = w[:, :, :hid, :], w[:, :, hid:, :]
    bh = jnp.zeros((3, wp, hid, W, out), jnp.float32)
    bx = jnp.zeros((3, wp, cin, W, out), jnp.float32)
    for kx in range(3):
        for x in range(W):
            bh = bh.at[:, x + kx, :, x, :].set(w_h[:, kx])
            bx = bx.at[:, x + kx, :, x, :].set(w_x[:, kx])
    bh = bh.reshape(3, wp * hid, W * out)
    bx = bx.reshape(3, wp * cin, W * out)
    return jnp.concatenate([bh, bx], axis=1).reshape(3 * wp * ct, W * out)


def convgru_pallas(x_btchw, wz, bz, wr, br, wq, bq, hidden_dim):
    """ConvGRU eval-mode forward.

    x_btchw: (B, T, C_in, H, W); weights OIHW (hid, hid+cin, 3, 3); biases (hid,).
    Returns (B, T, hid, H, W).
    """
    B, T, Cin, H, W = x_btchw.shape
    HID = hidden_dim
    CT = HID + Cin
    Wp = W + 2
    K = 3 * Wp * CT
    WH = W * HID

    # Lane-dense input: fold W into the lane dim (W*Cin = 128 for the test shapes) so
    # the per-step HBM->VMEM copy and the in-kernel loads are full-width.
    x = jnp.transpose(x_btchw, (0, 1, 3, 4, 2)).astype(jnp.float32)   # (B,T,H,W,Cin)
    x = x.reshape(B, T, H, W * Cin)

    # Pre-band the conv weights and fuse z/r into one matmul (done once, off the
    # critical path).
    wz_b = _band_weight(wz, HID, Cin, W)
    wr_b = _band_weight(wr, HID, Cin, W)
    wq_b = _band_weight(wq, HID, Cin, W)
    wzr_b = jnp.concatenate([wz_b, wr_b], axis=1)                     # (K, 2*W*HID)
    bzr = jnp.concatenate([jnp.tile(bz, W), jnp.tile(br, W)]
                          ).reshape(1, 2 * WH).astype(jnp.float32)
    bq2 = jnp.tile(bq, W).reshape(1, WH).astype(jnp.float32)

    kernel = functools.partial(_convgru_kernel, H=H, W=W, Cin=Cin, HID=HID)

    out = pl.pallas_call(
        kernel,
        out_shape=jax.ShapeDtypeStruct((B, T, H, WH), jnp.float32),
        grid_spec=pltpu.PrefetchScalarGridSpec(
            num_scalar_prefetch=0,
            grid=(B, T),
            in_specs=[
                pl.BlockSpec((1, 1, H, W * Cin), lambda b, t: (b, t, 0, 0)),  # x
                pl.BlockSpec((K, 2 * WH), lambda b, t: (0, 0)),               # W_zr
                pl.BlockSpec((K, WH), lambda b, t: (0, 0)),                   # W_q
                pl.BlockSpec((1, 2 * WH), lambda b, t: (0, 0)),               # b_zr
                pl.BlockSpec((1, WH), lambda b, t: (0, 0)),                   # b_q
            ],
            out_specs=pl.BlockSpec((1, 1, H, WH), lambda b, t: (b, t, 0, 0)),
            scratch_shapes=[
                pltpu.VMEM((H, WH), jnp.float32),            # hidden state (lane-dense)
                pltpu.VMEM((H + 2, Wp * CT), jnp.float32),   # zero-padded h||x rows
            ],
        ),
        # Time is a true recurrence -> "arbitrary"; batch rows are independent ->
        # "parallel" (v7x's second TensorCore takes half the batch).  Total VMEM use is
        # ~4 MiB here; re-tile B/H (with halos) before scaling toward v7x's 64 MiB cap.
        compiler_params=pltpu.CompilerParams(
            dimension_semantics=("parallel", "arbitrary"),
            vmem_limit_bytes=32 * 1024 * 1024),
    )(x, wzr_b, wq_b, bzr, bq2)

    # Unfold the lane-dense output back to the PyTorch layout (B, T, C_hid, H, W).
    out = out.reshape(B, T, H, W, HID)
    return jnp.transpose(out, (0, 1, 4, 2, 3))


def convgru_ref(x_btchw, wz, bz, wr, br, wq, bq, hidden_dim):
    """Pure-JAX reference matching the PyTorch eval forward."""
    B, T, Cin, H, W = x_btchw.shape

    def conv(inp, w, b):
        out = jax.lax.conv_general_dilated(
            inp.astype(jnp.float32), w.astype(jnp.float32), (1, 1), 'SAME',
            dimension_numbers=('NCHW', 'OIHW', 'NCHW'),
            precision=jax.lax.Precision.HIGHEST)
        return out + b[None, :, None, None]

    h = jnp.zeros((B, hidden_dim, H, W), jnp.float32)
    outs = []
    for t in range(T):
        xt = x_btchw[:, t].astype(jnp.float32)
        hx = jnp.concatenate([h, xt], axis=1)
        z = jax.nn.sigmoid(conv(hx, wz, bz))
        r = jax.nn.sigmoid(conv(hx, wr, br))
        q = jnp.tanh(conv(jnp.concatenate([r * h, xt], axis=1), wq, bq))
        h = (1.0 - z) * h + z * q
        outs.append(h)
    return jnp.stack(outs, axis=1)


if __name__ == "__main__":
    key = jax.random.PRNGKey(0)
    B, T, Cin, H, W = 2, 4, 16, 8, 8
    HID = 16
    CT = HID + Cin

    ks = jax.random.split(key, 7)
    x = jax.random.normal(ks[0], (B, T, Cin, H, W), jnp.float32)
    s = 0.1
    wz = s * jax.random.normal(ks[1], (HID, CT, 3, 3), jnp.float32)
    wr = s * jax.random.normal(ks[2], (HID, CT, 3, 3), jnp.float32)
    wq = s * jax.random.normal(ks[3], (HID, CT, 3, 3), jnp.float32)
    bz = s * jax.random.normal(ks[4], (HID,), jnp.float32)
    br = s * jax.random.normal(ks[5], (HID,), jnp.float32)
    bq = s * jax.random.normal(ks[6], (HID,), jnp.float32)

    run = jax.jit(functools.partial(convgru_pallas, hidden_dim=HID))
    out = run(x, wz, bz, wr, br, wq, bq)
    out = jax.block_until_ready(out)
    assert out.shape == (B, T, HID, H, W)

    ref = convgru_ref(x, wz, bz, wr, br, wq, bq, HID)
    np.testing.assert_allclose(np.asarray(out), np.asarray(ref),
                               atol=2e-4, rtol=2e-4)
    print("KERNEL_OK")
</pallas_src>

<mosaic_0001>
module attributes {stable_mosaic.version = 11 : i64} {
  func.func @_convgru_kernel(%arg0: i32, %arg1: i32, %arg2: memref<1x1x8x128xf32, #tpu.memory_space<vmem>>, %arg3: memref<960x256xf32, #tpu.memory_space<vmem>>, %arg4: memref<960x128xf32, #tpu.memory_space<vmem>>, %arg5: memref<1x256xf32, #tpu.memory_space<vmem>>, %arg6: memref<1x128xf32, #tpu.memory_space<vmem>>, %arg7: memref<1x1x8x128xf32, #tpu.memory_space<vmem>>, %arg8: memref<8x128xf32, #tpu.memory_space<vmem>>, %arg9: memref<10x320xf32, #tpu.memory_space<vmem>>) attributes {dimension_semantics = [#tpu.dimension_semantics<parallel>, #tpu.dimension_semantics<arbitrary>], iteration_bounds = array<i64: 2, 4>, scalar_prefetch = 0 : i64, scratch_operands = 2 : i64, tpu.core_type = #tpu.core_type<tc>, window_params = [{transform_indices = @transform_0, window_bounds = array<i64: 1, 1, 8, 128>}, {pipeline_mode = #tpu.pipeline_mode<synchronous>, transform_indices = @transform_1, window_bounds = array<i64: 960, 256>}, {pipeline_mode = #tpu.pipeline_mode<synchronous>, transform_indices = @transform_2, window_bounds = array<i64: 960, 128>}, {pipeline_mode = #tpu.pipeline_mode<synchronous>, transform_indices = @transform_3, window_bounds = array<i64: 1, 256>}, {pipeline_mode = #tpu.pipeline_mode<synchronous>, transform_indices = @transform_4, window_bounds = array<i64: 1, 128>}, {transform_indices = @transform_5, window_bounds = array<i64: 1, 1, 8, 128>}]} {
    %c0_i32 = arith.constant 0 : i32
    %0 = arith.cmpi eq, %arg1, %c0_i32 : i32
    %1 = arith.extui %0 : i1 to i32
    %c0_i32_0 = arith.constant 0 : i32
    %2 = arith.cmpi ne, %1, %c0_i32_0 : i32
    scf.if %2 {
      %cst_37 = arith.constant 0.000000e+00 : f32
      %45 = vector.broadcast %cst_37 : f32 to vector<8x128xf32>
      %c0_38 = arith.constant 0 : index
      %c0_39 = arith.constant 0 : index
      %46 = vector.load %arg8[%c0_38, %c0_39] : memref<8x128xf32, #tpu.memory_space<vmem>>, vector<8x128xf32>
      tpu.vector_store %arg8[%c0_38, %c0_39], %45 {strides = array<i32>} : memref<8x128xf32, #tpu.memory_space<vmem>>, vector<8x128xf32>,
      %cst_40 = arith.constant 0.000000e+00 : f32
      %47 = vector.broadcast %cst_40 : f32 to vector<10x320xf32>
      %c0_41 = arith.constant 0 : index
      %c0_42 = arith.constant 0 : index
      %48 = vector.load %arg9[%c0_41, %c0_42] : memref<10x320xf32, #tpu.memory_space<vmem>>, vector<10x320xf32>
      tpu.vector_store %arg9[%c0_41, %c0_42], %47 {strides = array<i32>} : memref<10x320xf32, #tpu.memory_space<vmem>>, vector<10x320xf32>,
    } else {
    }
    %c0 = arith.constant 0 : index
    %c0_1 = arith.constant 0 : index
    %c0_2 = arith.constant 0 : index
    %c0_3 = arith.constant 0 : index
    %3 = vector.load %arg2[%c0, %c0_1, %c0_2, %c0_3] : memref<1x1x8x128xf32, #tpu.memory_space<vmem>>, vector<1x1x8x128xf32>
    %4 = vector.shape_cast %3 : vector<1x1x8x128xf32> to vector<8x128xf32>
    %c0_4 = arith.constant 0 : index
    %c0_5 = arith.constant 0 : index
    %5 = vector.load %arg8[%c0_4, %c0_5] : memref<8x128xf32, #tpu.memory_space<vmem>>, vector<8x128xf32>
    %c1 = arith.constant 1 : index
    %c16 = arith.constant 16 : index
    %6 = vector.load %arg9[%c1, %c16] : memref<10x320xf32, #tpu.memory_space<vmem>>, vector<8x128xf32>
    tpu.vector_store %arg9[%c1, %c16], %5 {strides = array<i32>} : memref<10x320xf32, #tpu.memory_space<vmem>>, vector<8x128xf32>,
    %c1_6 = arith.constant 1 : index
    %c176 = arith.constant 176 : index
    %7 = vector.load %arg9[%c1_6, %c176] : memref<10x320xf32, #tpu.memory_space<vmem>>, vector<8x128xf32>
    tpu.vector_store %arg9[%c1_6, %c176], %4 {strides = array<i32>} : memref<10x320xf32, #tpu.memory_space<vmem>>, vector<8x128xf32>,
    %c0_7 = arith.constant 0 : index
    %c0_8 = arith.constant 0 : index
    %8 = vector.load %arg9[%c0_7, %c0_8] : memref<10x320xf32, #tpu.memory_space<vmem>>, vector<8x320xf32>
    %c1_9 = arith.constant 1 : index
    %c0_10 = arith.constant 0 : index
    %9 = vector.load %arg9[%c1_9, %c0_10] : memref<10x320xf32, #tpu.memory_space<vmem>>, vector<8x320xf32>
    %c2 = arith.constant 2 : index
    %c0_11 = arith.constant 0 : index
    %10 = vector.load %arg9[%c2, %c0_11] : memref<10x320xf32, #tpu.memory_space<vmem>>, vector<8x320xf32>
    %11 = tpu.concatenate %8, %9, %10 in 1 : vector<8x320xf32>, vector<8x320xf32>, vector<8x320xf32> -> vector<8x960xf32>
    %c0_12 = arith.constant 0 : index
    %c0_13 = arith.constant 0 : index
    %12 = vector.load %arg3[%c0_12, %c0_13] : memref<960x256xf32, #tpu.memory_space<vmem>>, vector<960x256xf32>
    %cst = arith.constant dense<0.000000e+00> : vector<8x256xf32>
    %13 = tpu.matmul %11, %12, %cst {dimension_numbers = #tpu.dot_dimension_numbers<[1], [0], [0], [1], [0, 0, 1, 1], [], []>} : vector<8x960xf32>, vector<960x256xf32>, vector<8x256xf32> -> vector<8x256xf32>
    %c0_14 = arith.constant 0 : index
    %c0_15 = arith.constant 0 : index
    %14 = vector.load %arg5[%c0_14, %c0_15] : memref<1x256xf32, #tpu.memory_space<vmem>>, vector<1x256xf32>
    %15 = vector.broadcast %14 : vector<1x256xf32> to vector<8x256xf32>
    %16 = arith.addf %13, %15 : vector<8x256xf32>
    %17 = arith.negf %16 : vector<8x256xf32>
    %18 = math.exp %17 : vector<8x256xf32>
    %cst_16 = arith.constant 1.000000e+00 : f32
    %19 = vector.broadcast %cst_16 : f32 to vector<8x256xf32>
    %20 = arith.addf %19, %18 : vector<8x256xf32>
    %21 = arith.divf %19, %20 : vector<8x256xf32>
    %22 = vector.extract_strided_slice %21 {offsets = [0, 0], sizes = [8, 128], strides = [1, 1]} : vector<8x256xf32> to vector<8x128xf32>
    %23 = vector.extract_strided_slice %21 {offsets = [0, 128], sizes = [8, 128], strides = [1, 1]} : vector<8x256xf32> to vector<8x128xf32>
    %24 = arith.mulf %23, %5 : vector<8x128xf32>
    %c1_17 = arith.constant 1 : index
    %c16_18 = arith.constant 16 : index
    %25 = vector.load %arg9[%c1_17, %c16_18] : memref<10x320xf32, #tpu.memory_space<vmem>>, vector<8x128xf32>
    tpu.vector_store %arg9[%c1_17, %c16_18], %24 {strides = array<i32>} : memref<10x320xf32, #tpu.memory_space<vmem>>, vector<8x128xf32>,
    %c0_19 = arith.constant 0 : index
    %c0_20 = arith.constant 0 : index
    %26 = vector.load %arg9[%c0_19, %c0_20] : memref<10x320xf32, #tpu.memory_space<vmem>>, vector<8x320xf32>
    %c1_21 = arith.constant 1 : index
    %c0_22 = arith.constant 0 : index
    %27 = vector.load %arg9[%c1_21, %c0_22] : memref<10x320xf32, #tpu.memory_space<vmem>>, vector<8x320xf32>
    %c2_23 = arith.constant 2 : index
    %c0_24 = arith.constant 0 : index
    %28 = vector.load %arg9[%c2_23, %c0_24] : memref<10x320xf32, #tpu.memory_space<vmem>>, vector<8x320xf32>
    %29 = tpu.concatenate %26, %27, %28 in 1 : vector<8x320xf32>, vector<8x320xf32>, vector<8x320xf32> -> vector<8x960xf32>
    %c0_25 = arith.constant 0 : index
    %c0_26 = arith.constant 0 : index
    %30 = vector.load %arg4[%c0_25, %c0_26] : memref<960x128xf32, #tpu.memory_space<vmem>>, vector<960x128xf32>
    %cst_27 = arith.constant dense<0.000000e+00> : vector<8x128xf32>
    %31 = tpu.matmul %29, %30, %cst_27 {dimension_numbers = #tpu.dot_dimension_numbers<[1], [0], [0], [1], [0, 0, 1, 1], [], []>} : vector<8x960xf32>, vector<960x128xf32>, vector<8x128xf32> -> vector<8x128xf32>
    %c0_28 = arith.constant 0 : index
    %c0_29 = arith.constant 0 : index
    %32 = vector.load %arg6[%c0_28, %c0_29] : memref<1x128xf32, #tpu.memory_space<vmem>>, vector<1x128xf32>
    %33 = vector.broadcast %32 : vector<1x128xf32> to vector<8x128xf32>
    %34 = arith.addf %31, %33 : vector<8x128xf32>
    %35 = math.tanh %34 : vector<8x128xf32>
    %cst_30 = arith.constant 1.000000e+00 : f32
    %36 = vector.broadcast %cst_30 : f32 to vector<8x128xf32>
    %37 = arith.subf %36, %22 : vector<8x128xf32>
    %38 = arith.mulf %37, %5 : vector<8x128xf32>
    %39 = arith.mulf %22, %35 : vector<8x128xf32>
    %40 = arith.addf %38, %39 : vector<8x128xf32>
    %c0_31 = arith.constant 0 : index
    %c0_32 = arith.constant 0 : index
    %41 = vector.load %arg8[%c0_31, %c0_32] : memref<8x128xf32, #tpu.memory_space<vmem>>, vector<8x128xf32>
    tpu.vector_store %arg8[%c0_31, %c0_32], %40 {strides = array<i32>} : memref<8x128xf32, #tpu.memory_space<vmem>>, vector<8x128xf32>,
    %c0_33 = arith.constant 0 : index
    %c0_34 = arith.constant 0 : index
    %c0_35 = arith.constant 0 : index
    %c0_36 = arith.constant 0 : index
    %42 = vector.load %arg7[%c0_33, %c0_34, %c0_35, %c0_36] : memref<1x1x8x128xf32, #tpu.memory_space<vmem>>, vector<1x1x8x128xf32>
    %43 = vector.shape_cast %42 : vector<1x1x8x128xf32> to vector<8x128xf32>
    %44 = vector.shape_cast %40 : vector<8x128xf32> to vector<1x1x8x128xf32>
    tpu.vector_store %arg7[%c0_33, %c0_34, %c0_35, %c0_36], %44 {strides = array<i32>} : memref<1x1x8x128xf32, #tpu.memory_space<vmem>>, vector<1x1x8x128xf32>,
    return
  }
  func.func @transform_0(%arg0: i32, %arg1: i32) -> (i32, i32, i32, i32) {
    %c0_i32 = arith.constant 0 : i32
    %c0_i32_0 = arith.constant 0 : i32
    %c0_i32_1 = arith.constant 0 : i32
    return %arg0, %arg1, %c0_i32, %c0_i32_0 : i32, i32, i32, i32
  }
  func.func @transform_1(%arg0: i32, %arg1: i32) -> (i32, i32) {
    %c0_i32 = arith.constant 0 : i32
    %c0_i32_0 = arith.constant 0 : i32
    %c0_i32_1 = arith.constant 0 : i32
    return %c0_i32, %c0_i32_0 : i32, i32
  }
  func.func @transform_2(%arg0: i32, %arg1: i32) -> (i32, i32) {
    %c0_i32 = arith.constant 0 : i32
    %c0_i32_0 = arith.constant 0 : i32
    %c0_i32_1 = arith.constant 0 : i32
    return %c0_i32, %c0_i32_0 : i32, i32
  }
  func.func @transform_3(%arg0: i32, %arg1: i32) -> (i32, i32) {
    %c0_i32 = arith.constant 0 : i32
    %c0_i32_0 = arith.constant 0 : i32
    %c0_i32_1 = arith.constant 0 : i32
    return %c0_i32, %c0_i32_0 : i32, i32
  }
  func.func @transform_4(%arg0: i32, %arg1: i32) -> (i32, i32) {
    %c0_i32 = arith.constant 0 : i32
    %c0_i32_0 = arith.constant 0 : i32
    %c0_i32_1 = arith.constant 0 : i32
    return %c0_i32, %c0_i32_0 : i32, i32
  }
  func.func @transform_5(%arg0: i32, %arg1: i32) -> (i32, i32, i32, i32) {
    %c0_i32 = arith.constant 0 : i32
    %c0_i32_0 = arith.constant 0 : i32
    %c0_i32_1 = arith.constant 0 : i32
    return %arg0, %arg1, %c0_i32, %c0_i32_0 : i32, i32, i32, i32
  }
}

</mosaic_0001>

<bundles_post_ra>
// kernel: tile.18
= control target key start
LH: loop header
LB: loop body
LE: loop exit
PB: predicated region body
PF: predicated region fallthrough
CT: control target
= control target key end

     0   :  { %s22_s0 = inlined_call_operand.vmem [shape: f32[16], index: 0, kind: input, shape index: {}]   ;;  %s23_s1 = inlined_call_operand.vmem [shape: f32[8,16], index: 1, kind: output, shape index: {}]  }
   0x1   :  { %v4_v0 = vld [vmem:[%s22_s0] ss:$0 sm:$0xff] }
   0x2   :  { %5 = vst [vmem:[%s23_s1] sm:$0xff] %v4_v0 }

// kernel: tile.19
= control target key start
LH: loop header
LB: loop body
LE: loop exit
PB: predicated region body
PF: predicated region fallthrough
CT: control target
= control target key end

     0   :  { %s67_s10 = smov 112   ;;  %s68_s11 = smov 80   ;;  %vm3_vm0 = vcmask 130048   ;;  %vm9_vm1 = vcmask 1048448   ;;  %vm15_vm2 = vcmask 917248   ;;  %vm21_vm3 = vcmask 786048   ;;  %s111_s0 = inlined_call_operand.vmem [shape: f32[8,16], index: 0, kind: input, shape index: {}]   ;;  %s112_s1 = inlined_call_operand.vmem [shape: f32[128], index: 1, kind: output, shape index: {}]  }
   0x1   :  { %v53_v0 = vld [vmem:[%s111_s0 + $0x7] sm:$0x1]   ;;  %v55_v1 = vld [vmem:[%s111_s0 + $0x5] sm:$0x1]   ;;  %v54_v2 = vld [vmem:[%s111_s0 + $0x6] sm:$0x1]  }
   0x2   :  { %7 = vrot.lane.b32.xlu0 %v53_v0, %s67_s10  ;;  %19 = vrot.lane.b32.xlu1 %v55_v1, %s68_s11  ;;  %v56_v3 = vld [vmem:[%s111_s0 + $0x4] sm:$0x1]   ;;  %v2_v4 = vld [vmem:[%s111_s0] sm:$0x1]   ;;  %s69_s18 = smov 96   ;;  %s70_s19 = smov 64  }
   0x3   :  { %4 = vst.msk [vmem:[#allocation0] sm:$0x1] %vm3_vm0, %v2_v4   ;;  %v57_v5 = vld [vmem:[%s111_s0 + $0x3] sm:$0x1]   ;;  %v58_v6 = vld [vmem:[%s111_s0 + $0x2] sm:$0x1]  }
   0x4   :  { %s71_s24 = smov 48   ;;  %s72_s25 = smov 32   ;;  %v59_v7 = vld [vmem:[%s111_s0 + $0x1] sm:$0x1]   ;;  %vm27_vm4 = vcmask 654848   ;;  %vm33_vm5 = vcmask 523648  }
   0x5   :  { %s73_s0 = smov 16   ;;  %vm39_vm6 = vcmask 392448   ;;  %vm45_vm7 = vcmask 261248  }
   0x6   :  { %13 = vrot.lane.b32.xlu0 %v54_v2, %s69_s18  ;;  %25 = vrot.lane.b32.xlu1 %v56_v3, %s70_s19 }
   0xa   :  { %31 = vrot.lane.b32.xlu0 %v57_v5, %s71_s24  ;;  %37 = vrot.lane.b32.xlu1 %v58_v6, %s72_s25 }
   0xe   :  { %43 = vrot.lane.b32.xlu0 %v59_v7, %s73_s0 }
  0x74   :  { %v8_v8 = vpop.permute.xlu0 %7   ;;  %v20_v9 = vpop.permute.xlu1 %19  }
  0x75   :  { %10 = vst.msk [vmem:[#allocation0] sm:$0x1] %vm9_vm1, %v8_v8  }
  0x78   :  { %v14_v10 = vpop.permute.xlu0 %13   ;;  %v26_v11 = vpop.permute.xlu1 %25  }
  0x79   :  { %16 = vst.msk [vmem:[#allocation0] sm:$0x1] %vm15_vm2, %v14_v10  }
  0x7a   :  { %22 = vst.msk [vmem:[#allocation0] sm:$0x1] %vm21_vm3, %v20_v9  }
  0x7b   :  { %28 = vst.msk [vmem:[#allocation0] sm:$0x1] %vm27_vm4, %v26_v11  }
  0x7c   :  { %v32_v12 = vpop.permute.xlu0 %31   ;;  %v38_v13 = vpop.permute.xlu1 %37  }
  0x7d   :  { %34 = vst.msk [vmem:[#allocation0] sm:$0x1] %vm33_vm5, %v32_v12  }
  0x7e   :  { %40 = vst.msk [vmem:[#allocation0] sm:$0x1] %vm39_vm6, %v38_v13  }
  0x80   :  { %v44_v14 = vpop.permute.xlu0 %43  }
  0x81   :  { %46 = vst.msk [vmem:[#allocation0] sm:$0x1] %vm45_vm7, %v44_v14  }
  0x88   :  { %v50_v15 = vld [vmem:[#allocation0] sm:$0x1] }
  0x89   :  { %52 = vst [vmem:[%s112_s1] sm:$0x1] %v50_v15 }

// kernel: tile.29
= control target key start
LH: loop header
LB: loop body
LE: loop exit
PB: predicated region body
PF: predicated region fallthrough
CT: control target
= control target key end

     0   :  { %s67_s10 = smov 112   ;;  %s68_s11 = smov 80   ;;  %vm3_vm0 = vcmask 130048   ;;  %vm9_vm1 = vcmask 1048448   ;;  %vm15_vm2 = vcmask 917248   ;;  %vm21_vm3 = vcmask 786048   ;;  %s111_s0 = inlined_call_operand.vmem [shape: f32[8,16], index: 0, kind: input, shape index: {}]   ;;  %s112_s1 = inlined_call_operand.vmem [shape: f32[1,128], index: 1, kind: output, shape index: {}]  }
   0x1   :  { %v53_v0 = vld [vmem:[%s111_s0 + $0x7] sm:$0x1]   ;;  %v55_v1 = vld [vmem:[%s111_s0 + $0x5] sm:$0x1]   ;;  %v54_v2 = vld [vmem:[%s111_s0 + $0x6] sm:$0x1]  }
   0x2   :  { %7 = vrot.lane.b32.xlu0 %v53_v0, %s67_s10  ;;  %19 = vrot.lane.b32.xlu1 %v55_v1, %s68_s11  ;;  %v56_v3 = vld [vmem:[%s111_s0 + $0x4] sm:$0x1]   ;;  %v2_v4 = vld [vmem:[%s111_s0] sm:$0x1]   ;;  %s69_s18 = smov 96   ;;  %s70_s19 = smov 64  }
   0x3   :  { %4 = vst.msk [vmem:[#allocation0] sm:$0x1] %vm3_vm0, %v2_v4   ;;  %v57_v5 = vld [vmem:[%s111_s0 + $0x3] sm:$0x1]   ;;  %v58_v6 = vld [vmem:[%s111_s0 + $0x2] sm:$0x1]  }
   0x4   :  { %s71_s24 = smov 48   ;;  %s72_s25 = smov 32   ;;  %v59_v7 = vld [vmem:[%s111_s0 + $0x1] sm:$0x1]   ;;  %vm27_vm4 = vcmask 654848   ;;  %vm33_vm5 = vcmask 523648  }
   0x5   :  { %s73_s0 = smov 16   ;;  %vm39_vm6 = vcmask 392448   ;;  %vm45_vm7 = vcmask 261248  }
   0x6   :  { %13 = vrot.lane.b32.xlu0 %v54_v2, %s69_s18  ;;  %25 = vrot.lane.b32.xlu1 %v56_v3, %s70_s19 }
   0xa   :  { %31 = vrot.lane.b32.xlu0 %v57_v5, %s71_s24  ;;  %37 = vrot.lane.b32.xlu1 %v58_v6, %s72_s25 }
   0xe   :  { %43 = vrot.lane.b32.xlu0 %v59_v7, %s73_s0 }
  0x74   :  { %v8_v8 = vpop.permute.xlu0 %7   ;;  %v20_v9 = vpop.permute.xlu1 %19  }
  0x75   :  { %10 = vst.msk [vmem:[#allocation0] sm:$0x1] %vm9_vm1, %v8_v8  }
  0x78   :  { %v14_v10 = vpop.permute.xlu0 %13   ;;  %v26_v11 = vpop.permute.xlu1 %25  }
  0x79   :  { %16 = vst.msk [vmem:[#allocation0] sm:$0x1] %vm15_vm2, %v14_v10  }
  0x7a   :  { %22 = vst.msk [vmem:[#allocation0] sm:$0x1] %vm21_vm3, %v20_v9  }
  0x7b   :  { %28 = vst.msk [vmem:[#allocation0] sm:$0x1] %vm27_vm4, %v26_v11  }
  0x7c   :  { %v32_v12 = vpop.permute.xlu0 %31   ;;  %v38_v13 = vpop.permute.xlu1 %37  }
  0x7d   :  { %34 = vst.msk [vmem:[#allocation0] sm:$0x1] %vm33_vm5, %v32_v12  }
  0x7e   :  { %40 = vst.msk [vmem:[#allocation0] sm:$0x1] %vm39_vm6, %v38_v13  }
  0x80   :  { %v44_v14 = vpop.permute.xlu0 %43  }
  0x81   :  { %46 = vst.msk [vmem:[#allocation0] sm:$0x1] %vm45_vm7, %v44_v14  }
  0x88   :  { %v50_v15 = vld [vmem:[#allocation0] sm:$0x1] }
  0x89   :  { %52 = vst [vmem:[%s112_s1] sm:$0x1] %v50_v15 }

// kernel: convgru_pallas.1
= control target key start
LH: loop header
LB: loop body
LE: loop exit
PB: predicated region body
PF: predicated region fallthrough
CT: control target
= control target key end

     0   :  { %s2123_s18 = smov 0   ;;  %s2125_s19 = smov 0   ;;  %s3324_s0 = inlined_call_operand.vmem [shape: f32[2,4,8,128], index: 0, kind: input, shape index: {}]   ;;  %s3325_s1 = inlined_call_operand.vmem [shape: f32[960,256], index: 1, kind: input, shape index: {}]   ;;  %s3326_s2 = inlined_call_operand.vmem [shape: f32[960,128], index: 2, kind: input, shape index: {}]   ;;  %s3327_s3 = inlined_call_operand.vmem [shape: f32[1,256], index: 3, kind: input, shape index: {}]   ;;  %s3328_s4 = inlined_call_operand.vmem [shape: f32[1,128], index: 4, kind: input, shape index: {}]   ;;  %s3329_s5 = inlined_call_operand.vmem [shape: f32[2,4,8,128], index: 5, kind: output, shape index: {}]  }
   0x1   :  { %s2127_s20 = smov 0   ;;  %s2129_s21 = smov 0  }
   0x2   :  { %s2131_s22 = smov 0  }
   0x3 LB: > { %s24_s23 = sadd.s32 1, %s2078_s20  ;;  %s27_s24 = sadd.s32 1, %s2082_s21  ;;  %s2086_s22 = sphi %s2131_s22, %s15_s22   ;;  %s2082_s21 = sphi %s2129_s21, %s3333_s21   ;;  %s2078_s20 = sphi %s2127_s20, %s3332_s20   ;;  %s2074_s19 = sphi %s2125_s19, %s3331_s19   ;;  %s2070_s18 = sphi %s2123_s18, %s3330_s18  }
   0x4   : > { %p25_p0 = scmp.ge.s32.totalorder %s24_s23, 4  ;;  %p1484_p1 = scmp.ge.s32.totalorder %s2086_s22, 1 }
   0x5   : > { %p206_p2 = scmp.lt.s32.totalorder %s2086_s22, 9 }
   0x6   : > { %s3335_s23 = smov (%p25_p0, %s24_s23), 0  ;;  %s3337_s24 = smov (!%p25_p0, %s27_s24), %s2082_s21 }
   0x7   : > { %p207_p3 = pnand %p1484_p1, %p206_p2  ;;  %p29_p4 = scmp.ge.s32.totalorder %s3337_s24, 2 }
   0x8   : > { %p240_p5 = scmp.lt.s32.totalorder (!%p207_p3), %s2074_s19, 1  ;;  %p242_p6 = scmp.lt.s32.totalorder (!%p207_p3), %s2070_s18, 3 }
   0x9   : > { %s3339_s24 = smov (%p29_p4, %s3337_s24), 0  ;;  %210 = sbr.rel (%p207_p3) target bundleno = 1154 (0x482), region = 40 }
   0xa   : > { %p1489_p7 = scmp.ne.s32.totalorder (!%p207_p3), %s2070_s18, 0 }
  0x10   : > { %s3341_s19 = smov (!%p240_p5, %s2074_s19), 1  ;;  %259 = sbr.rel (%p1489_p7) target bundleno = 23 (0x17), region = 44 }
  0x11   : > { %s243_s25 = scalar_select %p242_p6, %s2070_s18, 3 }
  0x12   : > { %s1485_s26 = sshll.u32 %s3341_s19, 2  ;;  %vm263_vm0 = vcmask (!%p1489_p7), 523264   ;;  %vm267_vm1 = vcmask (!%p1489_p7), 517120   ;;  %v2088_v0 = vmov (!%p1489_p7), 0.0  }
  0x13   : > { %s245_s27 = sadd.s32 %s1485_s26, %s243_s25  ;;  %260 = vst [vmem:[#allocation2] sm:$0xff] (!%p1489_p7), %v2088_v0  ;;  %261 = vst [vmem:[#allocation3] sm:$0xff] (!%p1489_p7), %v2088_v0 }
  0x14   : > { %s1486_s28 = sshll.u32 %s245_s27, 3  ;;  %262 = vst [vmem:[#allocation3 + $0x8] sm:$0xff] (!%p1489_p7), %v2088_v0  ;;  %265 = vst [vmem:[#allocation3 + $0x18] sm:$0x3] (!%p1489_p7), %v2088_v0 }
  0x15   : > { %s247_s6 = scalar_lea.vmem %s3324_s0, %s1486_s28  ;;  %s2159_s9 = scalar_lea.vmem %s3329_s5, %s1486_s28  ;;  %266 = vst [vmem:[#allocation3 + $0x20] sm:$0x3] (!%p1489_p7), %v2088_v0  ;;  %264 = vst.msk [vmem:[#allocation3 + $0x10] sm:$0xff] (!%p1489_p7), %vm263_vm0, %v2088_v0 }
  0x16   : > { %268 = vst.msk [vmem:[#allocation3 + $0x28] sm:$0x3] (!%p1489_p7), %vm267_vm1, %v2088_v0 }
  0x17 PF: > { %v269_v2 = vld [vmem:[%s247_s6] sm:$0xff]  ;;  %v360_v3 = vld [vmem:[%s3325_s1 + $0x8] sm:$0xff]  ;;  %v362_v5 = vld [vmem:[%s3325_s1 + $0x18] sm:$0xff]  ;;  %s2089_s29 = smov 16   ;;  %s2090_s18 = smov 48   ;;  %vm276_vm2 = vcmask 1047681  }
  0x18   : > { %v359_v6 = vld [vmem:[%s3325_s1] sm:$0xff]  ;;  %v361_v7 = vld [vmem:[%s3325_s1 + $0x10] sm:$0xff]  ;;  %v1602_v8 = vpack.c.bf16 %v362_v5, %v360_v3  ;;  %v364_v10 = vld [vmem:[%s3325_s1 + $0x28] sm:$0xff]  ;;  %v285_v13 = vrot.slane %v269_v2, 7  ;;  %vm278_vm3 = vcmask 130049   ;;  %vm280_vm4 = vcmask 1040512  }
  0x19   : > { %v1604_v9 = vpack.c.bf16 %v361_v7, %v359_v6  ;;  %v366_v11 = vld [vmem:[%s3325_s1 + $0x38] sm:$0xff]  ;;  %v363_v12 = vld [vmem:[%s3325_s1 + $0x20] sm:$0xff]  ;;  %v365_v15 = vld [vmem:[%s3325_s1 + $0x30] sm:$0xff]  ;;  %vm282_vm5 = vcmask 122880   ;;  %vm289_vm6 = vcmask 1047937   ;;  %vm291_vm7 = vcmask 392193  }
  0x1a   : > { %v270_v1 = vld [vmem:[#allocation2] sm:$0xff]  ;;  %v1606_v14 = vpack.c.bf16 %v366_v11, %v364_v10  ;;  %v368_v16 = vld [vmem:[%s3325_s1 + $0x48] sm:$0xff]  ;;  %v370_v17 = vld [vmem:[%s3325_s1 + $0x58] sm:$0xff]  ;;  %1603 = vmatprep.subr.bf16.mxu0 %v1602_v8  ;;  %v1608_v18 = vpack.c.bf16 %v365_v15, %v363_v12  ;;  %vm293_vm8 = vcmask 1040768   ;;  %vm295_vm9 = vcmask 385024   ;;  %s2091_s11 = smov 64  }
  0x1b   : > { %v272_v4 = vrot.slane %v270_v1, 7  ;;  %1605 = vmatpush1.bf16.msra.mxu0 %v1604_v9  ;;  %v1610_v19 = vpack.c.bf16 %v370_v17, %v368_v16  ;;  %v367_v20 = vld [vmem:[%s3325_s1 + $0x40] sm:$0xff]  ;;  %v369_v21 = vld [vmem:[%s3325_s1 + $0x50] sm:$0xff]  ;;  %v372_v22 = vld [vmem:[%s3325_s1 + $0x68] sm:$0xff]  ;;  %vm334_vm10 = vcmask 523264   ;;  %vm346_vm11 = vcmask 1045504  }
  0x1c   : > { %1607 = vmatprep.subr.bf16.mxu0 %v1606_v14  ;;  %v374_v23 = vld [vmem:[%s3325_s1 + $0x78] sm:$0xff]  ;;  %v552_v24 = vld [vmem:[%s3325_s1 + $0x608] sm:$0xff]  ;;  %v551_v27 = vld [vmem:[%s3325_s1 + $0x600] sm:$0xff]  ;;  %v1612_v28 = vpack.c.bf16 %v369_v21, %v367_v20  ;;  %vm318_vm12 = vcmask 1046528  }
  0x1d   : > { %273 = vrot.lane.b32.xlu0 %v272_v4, %s2089_s29  ;;  %v554_v25 = vld [vmem:[%s3325_s1 + $0x618] sm:$0xff]  ;;  %v371_v29 = vld [vmem:[%s3325_s1 + $0x60] sm:$0xff]  ;;  %v373_v30 = vld [vmem:[%s3325_s1 + $0x70] sm:$0xff]  ;;  %v1614_v32 = vpack.c.bf16 %v374_v23, %v372_v22 }
  0x1e   : > { %v1794_v26 = vpack.c.bf16 %v554_v25, %v552_v24  ;;  %v553_v31 = vld [vmem:[%s3325_s1 + $0x610] sm:$0xff]  ;;  %v376_v33 = vld [vmem:[%s3325_s1 + $0x88] sm:$0xff]  ;;  %v558_v36 = vld [vmem:[%s3325_s1 + $0x638] sm:$0xff]  ;;  %v1616_v43 = vpack.c.bf16 %v373_v30, %v371_v29 }
  0x1f   : > { %1609 = vmatpush1.bf16.msra.mxu0 %v1608_v18  ;;  %v1796_v34 = vpack.c.bf16 %v553_v31, %v551_v27  ;;  %v556_v35 = vld [vmem:[%s3325_s1 + $0x628] sm:$0xff]  ;;  %v378_v37 = vld [vmem:[%s3325_s1 + $0x98] sm:$0xff]  ;;  %v555_v39 = vld [vmem:[%s3325_s1 + $0x620] sm:$0xff] }
  0x20   : > { %1611 = vmatprep.subr.bf16.mxu0 %v1610_v19  ;;  %1795 = vmatprep.subr.bf16.mxu1 %v1794_v26  ;;  %v1798_v38 = vpack.c.bf16 %v558_v36, %v556_v35  ;;  %v557_v40 = vld [vmem:[%s3325_s1 + $0x630] sm:$0xff]  ;;  %v560_v42 = vld [vmem:[%s3325_s1 + $0x648] sm:$0xff]  ;;  %v375_v44 = vld [vmem:[%s3325_s1 + $0x80] sm:$0xff]  ;;  %v1618_v47 = vpack.c.bf16 %v378_v37, %v376_v33 }
  0x21   : > { %286 = vrot.lane.b32.xlu0 %v285_v13, %s2090_s18  ;;  %1797 = vmatpush1.bf16.msra.mxu1 %v1796_v34  ;;  %v1800_v41 = vpack.c.bf16 %v557_v40, %v555_v39  ;;  %v377_v45 = vld [vmem:[%s3325_s1 + $0x90] sm:$0xff]  ;;  %v562_v46 = vld [vmem:[%s3325_s1 + $0x658] sm:$0xff]  ;;  %v380_v48 = vld [vmem:[%s3325_s1 + $0xa8] sm:$0xff] }
  0x22   : > { %1799 = vmatprep.subr.bf16.mxu1 %v1798_v38  ;;  %v1802_v49 = vpack.c.bf16 %v562_v46, %v560_v42  ;;  %v559_v50 = vld [vmem:[%s3325_s1 + $0x640] sm:$0xff]  ;;  %v561_v51 = vld [vmem:[%s3325_s1 + $0x650] sm:$0xff]  ;;  %v382_v52 = vld [vmem:[%s3325_s1 + $0xb8] sm:$0xff]  ;;  %v1620_v56 = vpack.c.bf16 %v377_v45, %v375_v44 }
  0x23   : > { %1613 = vmatpush1.bf16.msra.mxu0 %v1612_v28  ;;  %v564_v53 = vld [vmem:[%s3325_s1 + $0x668] sm:$0xff]  ;;  %v566_v54 = vld [vmem:[%s3325_s1 + $0x678] sm:$0xff]  ;;  %v1804_v55 = vpack.c.bf16 %v561_v51, %v559_v50  ;;  %v379_v57 = vld [vmem:[%s3325_s1 + $0xa0] sm:$0xff]  ;;  %v1622_v61 = vpack.c.bf16 %v382_v52, %v380_v48 }
  0x24   : > { %1615 = vmatprep.subr.bf16.mxu0 %v1614_v32  ;;  %v1806_v58 = vpack.c.bf16 %v566_v54, %v564_v53  ;;  %v563_v59 = vld [vmem:[%s3325_s1 + $0x660] sm:$0xff]  ;;  %v565_v60 = vld [vmem:[%s3325_s1 + $0x670] sm:$0xff]  ;;  %v568_v63 = vld [vmem:[%s3325_s1 + $0x688] sm:$0xff] }
  0x25   : > { %1801 = vmatpush1.bf16.msra.mxu1 %v1800_v41  ;;  %v381_v62 = vld [vmem:[%s3325_s1 + $0xb0] sm:$0xff]  ;;  %v570_v0 = vld [vmem:[%s3325_s1 + $0x698] sm:$0xff]  ;;  %v384_v1 = vld [vmem:[%s3325_s1 + $0xc8] sm:$0xff]  ;;  %v1808_v3 = vpack.c.bf16 %v565_v60, %v563_v59 }
  0x26   : > { %1803 = vmatprep.subr.bf16.mxu1 %v1802_v49  ;;  %v386_v2 = vld [vmem:[%s3325_s1 + $0xd8] sm:$0xff]  ;;  %v1624_v4 = vpack.c.bf16 %v381_v62, %v379_v57  ;;  %v383_v5 = vld [vmem:[%s3325_s1 + $0xc0] sm:$0xff]  ;;  %v1810_v6 = vpack.c.bf16 %v570_v0, %v568_v63  ;;  %v569_v8 = vld [vmem:[%s3325_s1 + $0x690] sm:$0xff] }
  0x27   : > { %1617 = vmatpush1.bf16.msra.mxu0 %v1616_v43  ;;  %v567_v7 = vld [vmem:[%s3325_s1 + $0x680] sm:$0xff]  ;;  %v1626_v9 = vpack.c.bf16 %v386_v2, %v384_v1  ;;  %v385_v10 = vld [vmem:[%s3325_s1 + $0xd0] sm:$0xff]  ;;  %v572_v11 = vld [vmem:[%s3325_s1 + $0x6a8] sm:$0xff] }
  0x28   : > { %1619 = vmatprep.subr.bf16.mxu0 %v1618_v47  ;;  %v574_v12 = vld [vmem:[%s3325_s1 + $0x6b8] sm:$0xff]  ;;  %v388_v13 = vld [vmem:[%s3325_s1 + $0xe8] sm:$0xff]  ;;  %v1812_v15 = vpack.c.bf16 %v569_v8, %v567_v7  ;;  %v1628_v16 = vpack.c.bf16 %v385_v10, %v383_v5  ;;  %v387_v17 = vld [vmem:[%s3325_s1 + $0xe0] sm:$0xff] }
  0x29   : > { %1805 = vmatpush1.bf16.msra.mxu1 %v1804_v55  ;;  %v390_v14 = vld [vmem:[%s3325_s1 + $0xf8] sm:$0xff]  ;;  %v1814_v18 = vpack.c.bf16 %v574_v12, %v572_v11  ;;  %v571_v19 = vld [vmem:[%s3325_s1 + $0x6a0] sm:$0xff]  ;;  %v573_v20 = vld [vmem:[%s3325_s1 + $0x6b0] sm:$0xff] }
  0x2a   : > { %1807 = vmatprep.subr.bf16.mxu1 %v1806_v58  ;;  %v1630_v21 = vpack.c.bf16 %v390_v14, %v388_v13  ;;  %v389_v22 = vld [vmem:[%s3325_s1 + $0xf0] sm:$0xff]  ;;  %v576_v23 = vld [vmem:[%s3325_s1 + $0x6c8] sm:$0xff]  ;;  %v578_v24 = vld [vmem:[%s3325_s1 + $0x6d8] sm:$0xff]  ;;  %v1816_v27 = vpack.c.bf16 %v573_v20, %v571_v19 }
  0x2b   : > { %1621 = vmatpush1.bf16.msra.mxu0 %v1620_v56  ;;  %v392_v25 = vld [vmem:[%s3325_s1 + $0x108] sm:$0xff]  ;;  %v394_v26 = vld [vmem:[%s3325_s1 + $0x118] sm:$0xff]  ;;  %v1632_v28 = vpack.c.bf16 %v389_v22, %v387_v17  ;;  %v391_v29 = vld [vmem:[%s3325_s1 + $0x100] sm:$0xff]  ;;  %v1818_v30 = vpack.c.bf16 %v578_v24, %v576_v23 }
  0x2c   : > { %1623 = vmatprep.subr.bf16.mxu0 %v1622_v61  ;;  %v575_v31 = vld [vmem:[%s3325_s1 + $0x6c0] sm:$0xff]  ;;  %v577_v32 = vld [vmem:[%s3325_s1 + $0x6d0] sm:$0xff]  ;;  %v1634_v33 = vpack.c.bf16 %v394_v26, %v392_v25  ;;  %v580_v35 = vld [vmem:[%s3325_s1 + $0x6e8] sm:$0xff] }
  0x2d   : > { %1809 = vmatpush1.bf16.msra.mxu1 %v1808_v3  ;;  %v393_v34 = vld [vmem:[%s3325_s1 + $0x110] sm:$0xff]  ;;  %v582_v36 = vld [vmem:[%s3325_s1 + $0x6f8] sm:$0xff]  ;;  %v396_v37 = vld [vmem:[%s3325_s1 + $0x128] sm:$0xff]  ;;  %v1820_v39 = vpack.c.bf16 %v577_v32, %v575_v31 }
  0x2e   : > { %1811 = vmatprep.subr.bf16.mxu1 %v1810_v6  ;;  %v398_v38 = vld [vmem:[%s3325_s1 + $0x138] sm:$0xff]  ;;  %v1636_v40 = vpack.c.bf16 %v393_v34, %v391_v29  ;;  %v395_v41 = vld [vmem:[%s3325_s1 + $0x120] sm:$0xff]  ;;  %v1822_v42 = vpack.c.bf16 %v582_v36, %v580_v35  ;;  %v581_v44 = vld [vmem:[%s3325_s1 + $0x6f0] sm:$0xff] }
  0x2f   : > { %1625 = vmatpush1.bf16.msra.mxu0 %v1624_v4  ;;  %v579_v43 = vld [vmem:[%s3325_s1 + $0x6e0] sm:$0xff]  ;;  %v1638_v45 = vpack.c.bf16 %v398_v38, %v396_v37  ;;  %v397_v46 = vld [vmem:[%s3325_s1 + $0x130] sm:$0xff]  ;;  %v584_v47 = vld [vmem:[%s3325_s1 + $0x708] sm:$0xff] }
  0x30   : > { %1627 = vmatprep.subr.bf16.mxu0 %v1626_v9  ;;  %v586_v48 = vld [vmem:[%s3325_s1 + $0x718] sm:$0xff]  ;;  %v400_v49 = vld [vmem:[%s3325_s1 + $0x148] sm:$0xff]  ;;  %v1824_v51 = vpack.c.bf16 %v581_v44, %v579_v43  ;;  %v1640_v52 = vpack.c.bf16 %v397_v46, %v395_v41  ;;  %v399_v53 = vld [vmem:[%s3325_s1 + $0x140] sm:$0xff] }
  0x31   : > { %1813 = vmatpush1.bf16.msra.mxu1 %v1812_v15  ;;  %v402_v50 = vld [vmem:[%s3325_s1 + $0x158] sm:$0xff]  ;;  %v1826_v54 = vpack.c.bf16 %v586_v48, %v584_v47  ;;  %v583_v55 = vld [vmem:[%s3325_s1 + $0x700] sm:$0xff]  ;;  %v585_v56 = vld [vmem:[%s3325_s1 + $0x710] sm:$0xff] }
  0x32   : > { %1815 = vmatprep.subr.bf16.mxu1 %v1814_v18  ;;  %v1642_v57 = vpack.c.bf16 %v402_v50, %v400_v49  ;;  %v401_v58 = vld [vmem:[%s3325_s1 + $0x150] sm:$0xff]  ;;  %v588_v59 = vld [vmem:[%s3325_s1 + $0x728] sm:$0xff]  ;;  %v590_v60 = vld [vmem:[%s3325_s1 + $0x738] sm:$0xff]  ;;  %v1828_v63 = vpack.c.bf16 %v585_v56, %v583_v55 }
  0x33   : > { %1629 = vmatpush1.bf16.msra.mxu0 %v1628_v16  ;;  %v404_v61 = vld [vmem:[%s3325_s1 + $0x168] sm:$0xff]  ;;  %v406_v62 = vld [vmem:[%s3325_s1 + $0x178] sm:$0xff]  ;;  %v1644_v0 = vpack.c.bf16 %v401_v58, %v399_v53  ;;  %v403_v1 = vld [vmem:[%s3325_s1 + $0x160] sm:$0xff]  ;;  %v1830_v2 = vpack.c.bf16 %v590_v60, %v588_v59 }
  0x34   : > { %1631 = vmatprep.subr.bf16.mxu0 %v1630_v21  ;;  %v587_v3 = vld [vmem:[%s3325_s1 + $0x720] sm:$0xff]  ;;  %v589_v4 = vld [vmem:[%s3325_s1 + $0x730] sm:$0xff]  ;;  %v1646_v5 = vpack.c.bf16 %v406_v62, %v404_v61  ;;  %v592_v7 = vld [vmem:[%s3325_s1 + $0x748] sm:$0xff] }
  0x35   : > { %1817 = vmatpush1.bf16.msra.mxu1 %v1816_v27  ;;  %v405_v6 = vld [vmem:[%s3325_s1 + $0x170] sm:$0xff]  ;;  %v594_v8 = vld [vmem:[%s3325_s1 + $0x758] sm:$0xff]  ;;  %v408_v9 = vld [vmem:[%s3325_s1 + $0x188] sm:$0xff]  ;;  %v1832_v11 = vpack.c.bf16 %v589_v4, %v587_v3 }
  0x36   : > { %1819 = vmatprep.subr.bf16.mxu1 %v1818_v30  ;;  %v410_v10 = vld [vmem:[%s3325_s1 + $0x198] sm:$0xff]  ;;  %v1648_v12 = vpack.c.bf16 %v405_v6, %v403_v1  ;;  %v407_v13 = vld [vmem:[%s3325_s1 + $0x180] sm:$0xff]  ;;  %v1834_v14 = vpack.c.bf16 %v594_v8, %v592_v7  ;;  %v593_v16 = vld [vmem:[%s3325_s1 + $0x750] sm:$0xff] }
  0x37   : > { %1633 = vmatpush1.bf16.msra.mxu0 %v1632_v28  ;;  %v591_v15 = vld [vmem:[%s3325_s1 + $0x740] sm:$0xff]  ;;  %v1650_v17 = vpack.c.bf16 %v410_v10, %v408_v9  ;;  %v409_v18 = vld [vmem:[%s3325_s1 + $0x190] sm:$0xff]  ;;  %v596_v19 = vld [vmem:[%s3325_s1 + $0x768] sm:$0xff] }
  0x38   : > { %1635 = vmatprep.subr.bf16.mxu0 %v1634_v33  ;;  %v598_v20 = vld [vmem:[%s3325_s1 + $0x778] sm:$0xff]  ;;  %v412_v21 = vld [vmem:[%s3325_s1 + $0x1a8] sm:$0xff]  ;;  %v1836_v23 = vpack.c.bf16 %v593_v16, %v591_v15  ;;  %v1652_v24 = vpack.c.bf16 %v409_v18, %v407_v13  ;;  %v595_v26 = vld [vmem:[%s3325_s1 + $0x760] sm:$0xff] }
  0x39   : > { %1821 = vmatpush1.bf16.msra.mxu1 %v1820_v39  ;;  %v414_v22 = vld [vmem:[%s3325_s1 + $0x1b8] sm:$0xff]  ;;  %v1838_v25 = vpack.c.bf16 %v598_v20, %v596_v19  ;;  %v597_v27 = vld [vmem:[%s3325_s1 + $0x770] sm:$0xff]  ;;  %v411_v29 = vld [vmem:[%s3325_s1 + $0x1a0] sm:$0xff] }
  0x3a   : > { %1823 = vmatprep.subr.bf16.mxu1 %v1822_v42  ;;  %v1654_v28 = vpack.c.bf16 %v414_v22, %v412_v21  ;;  %v413_v30 = vld [vmem:[%s3325_s1 + $0x1b0] sm:$0xff]  ;;  %v416_v31 = vld [vmem:[%s3325_s1 + $0x1c8] sm:$0xff]  ;;  %v418_v32 = vld [vmem:[%s3325_s1 + $0x1d8] sm:$0xff]  ;;  %v1840_v33 = vpack.c.bf16 %v597_v27, %v595_v26 }
  0x3b   : > { %1637 = vmatpush1.bf16.msra.mxu0 %v1636_v40  ;;  %v1656_v34 = vpack.c.bf16 %v413_v30, %v411_v29  ;;  %v1658_v35 = vpack.c.bf16 %v418_v32, %v416_v31  ;;  %v415_v36 = vld [vmem:[%s3325_s1 + $0x1c0] sm:$0xff]  ;;  %v417_v37 = vld [vmem:[%s3325_s1 + $0x1d0] sm:$0xff]  ;;  %v420_v38 = vld [vmem:[%s3325_s1 + $0x1e8] sm:$0xff] }
  0x3c   : > { %1639 = vmatprep.subr.bf16.mxu0 %v1638_v45  ;;  %v422_v39 = vld [vmem:[%s3325_s1 + $0x1f8] sm:$0xff]  ;;  %v1660_v40 = vpack.c.bf16 %v417_v37, %v415_v36  ;;  %v419_v42 = vld [vmem:[%s3325_s1 + $0x1e0] sm:$0xff]  ;;  %v421_v43 = vld [vmem:[%s3325_s1 + $0x1f0] sm:$0xff] }
  0x3d   : > { %1825 = vmatpush1.bf16.msra.mxu1 %v1824_v51  ;;  %v1662_v41 = vpack.c.bf16 %v422_v39, %v420_v38  ;;  %v424_v44 = vld [vmem:[%s3325_s1 + $0x208] sm:$0xff]  ;;  %v426_v45 = vld [vmem:[%s3325_s1 + $0x218] sm:$0xff]  ;;  %v1664_v46 = vpack.c.bf16 %v421_v43, %v419_v42  ;;  %v423_v51 = vld [vmem:[%s3325_s1 + $0x200] sm:$0xff] }
  0x3e   : > { %1827 = vmatprep.subr.bf16.mxu1 %v1826_v54  ;;  %v1666_v47 = vpack.c.bf16 %v426_v45, %v424_v44  ;;  %v428_v54 = vld [vmem:[%s3325_s1 + $0x228] sm:$0xff]  ;;  %v430_v55 = vld [vmem:[%s3325_s1 + $0x238] sm:$0xff]  ;;  %v427_v56 = vld [vmem:[%s3325_s1 + $0x220] sm:$0xff] }
  0x3f   : > { %1641 = vmatpush1.bf16.msra.mxu0 %v1640_v52  ;;  %v425_v52 = vld [vmem:[%s3325_s1 + $0x210] sm:$0xff]  ;;  %v432_v61 = vld [vmem:[%s3325_s1 + $0x248] sm:$0xff]  ;;  %v434_v62 = vld [vmem:[%s3325_s1 + $0x258] sm:$0xff]  ;;  %v1670_v3 = vpack.c.bf16 %v430_v55, %v428_v54 }
  0x40   : > { %1643 = vmatprep.subr.bf16.mxu0 %v1642_v57  ;;  %v429_v57 = vld [vmem:[%s3325_s1 + $0x230] sm:$0xff]  ;;  %v1668_v60 = vpack.c.bf16 %v425_v52, %v423_v51  ;;  %v431_v16 = vld [vmem:[%s3325_s1 + $0x240] sm:$0xff]  ;;  %v1674_v20 = vpack.c.bf16 %v434_v62, %v432_v61  ;;  %v452_v52 = vld [vmem:[%s3325_s1 + $0x2e8] sm:$0xff] }
  0x41   : > { %1829 = vmatpush1.bf16.msra.mxu1 %v1828_v63  ;;  %v1672_v15 = vpack.c.bf16 %v429_v57, %v427_v56  ;;  %v433_v21 = vld [vmem:[%s3325_s1 + $0x250] sm:$0xff]  ;;  %v435_v31 = vld [vmem:[%s3325_s1 + $0x260] sm:$0xff] }
  0x42   : > { %1831 = vmatprep.subr.bf16.mxu1 %v1830_v2  ;;  %v1676_v29 = vpack.c.bf16 %v433_v21, %v431_v16  ;;  %v437_v32 = vld [vmem:[%s3325_s1 + $0x270] sm:$0xff]  ;;  %v439_v38 = vld [vmem:[%s3325_s1 + $0x280] sm:$0xff] }
  0x43   : > { %1645 = vmatpush1.bf16.msra.mxu0 %v1644_v0  ;;  %v1680_v36 = vpack.c.bf16 %v437_v32, %v435_v31  ;;  %v441_v39 = vld [vmem:[%s3325_s1 + $0x290] sm:$0xff]  ;;  %v443_v44 = vld [vmem:[%s3325_s1 + $0x2a0] sm:$0xff]  ;;  %v482_v31 = vld [vmem:[%s3325_s1 + $0x3d8] sm:$0xff] }
  0x44   : > { %1647 = vmatprep.subr.bf16.mxu0 %v1646_v5  ;;  %v1684_v42 = vpack.c.bf16 %v441_v39, %v439_v38  ;;  %v445_v45 = vld [vmem:[%s3325_s1 + $0x2b0] sm:$0xff]  ;;  %v451_v56 = vld [vmem:[%s3325_s1 + $0x2e0] sm:$0xff] }
  0x45   : > { %1833 = vmatpush1.bf16.msra.mxu1 %v1832_v11  ;;  %v449_v51 = vld [vmem:[%s3325_s1 + $0x2d0] sm:$0xff]  ;;  %v455_v62 = vld [vmem:[%s3325_s1 + $0x300] sm:$0xff] }
  0x46   : > { %1835 = vmatprep.subr.bf16.mxu1 %v1834_v14  ;;  %v453_v57 = vld [vmem:[%s3325_s1 + $0x2f0] sm:$0xff]  ;;  %v467_v16 = vld [vmem:[%s3325_s1 + $0x360] sm:$0xff] }
  0x47   : > { %1649 = vmatpush1.bf16.msra.mxu0 %v1648_v12 }
  0x48   : > { %1651 = vmatprep.subr.bf16.mxu0 %v1650_v17 }
  0x49   : > { %1837 = vmatpush1.bf16.msra.mxu1 %v1836_v23 }
  0x4a   : > { %1839 = vmatprep.subr.bf16.mxu1 %v1838_v25  ;;  %v438_v25 = vld [vmem:[%s3325_s1 + $0x278] sm:$0xff] }
  0x4b   : > { %1653 = vmatpush1.bf16.msra.mxu0 %v1652_v24  ;;  %v436_v24 = vld [vmem:[%s3325_s1 + $0x268] sm:$0xff] }
  0x4c   : > { %1655 = vmatprep.subr.bf16.mxu0 %v1654_v28  ;;  %v1678_v30 = vpack.c.bf16 %v438_v25, %v436_v24  ;;  %v476_v24 = vld [vmem:[%s3325_s1 + $0x3a8] sm:$0xff]  ;;  %v478_v25 = vld [vmem:[%s3325_s1 + $0x3b8] sm:$0xff] }
  0x4d   : > { %1841 = vmatpush1.bf16.msra.mxu1 %v1840_v33  ;;  %v440_v33 = vld [vmem:[%s3325_s1 + $0x288] sm:$0xff] }
  0x4f   : > { %1657 = vmatpush1.bf16.msra.mxu0 %v1656_v34  ;;  %v442_v34 = vld [vmem:[%s3325_s1 + $0x298] sm:$0xff] }
  0x50   : > { %1659 = vmatprep.subr.bf16.mxu0 %v1658_v35  ;;  %v1682_v37 = vpack.c.bf16 %v442_v34, %v440_v33  ;;  %v479_v34 = vld [vmem:[%s3325_s1 + $0x3c0] sm:$0xff] }
  0x53   : > { %1661 = vmatpush1.bf16.msra.mxu0 %v1660_v40  ;;  %v444_v40 = vld [vmem:[%s3325_s1 + $0x2a8] sm:$0xff] }
  0x54   : > { %1663 = vmatprep.subr.bf16.mxu0 %v1662_v41  ;;  %v446_v41 = vld [vmem:[%s3325_s1 + $0x2b8] sm:$0xff] }
  0x55   : > { %v1686_v43 = vpack.c.bf16 %v446_v41, %v444_v40  ;;  %v483_v40 = vld [vmem:[%s3325_s1 + $0x3e0] sm:$0xff]  ;;  %v485_v41 = vld [vmem:[%s3325_s1 + $0x3f0] sm:$0xff] }
  0x57   : > { %1665 = vmatpush1.bf16.msra.mxu0 %v1664_v46  ;;  %v448_v46 = vld [vmem:[%s3325_s1 + $0x2c8] sm:$0xff] }
  0x58   : > { %1667 = vmatprep.subr.bf16.mxu0 %v1666_v47  ;;  %v450_v47 = vld [vmem:[%s3325_s1 + $0x2d8] sm:$0xff] }
  0x8f   : > { %v274_v48 = vpop.permute.xlu0 %273 }
  0x90   : > { %277 = vst.msk [vmem:[#allocation3] sm:$0xfe] %vm276_vm2, %v274_v48 }
  0x91   : > { %279 = vst.msk [vmem:[#allocation3 + $0x8] sm:$0xfe] %vm278_vm3, %v274_v48 }
  0x92   : > { %281 = vst.msk [vmem:[#allocation3 + $0x18] sm:$0x1] %vm280_vm4, %v274_v48 }
  0x93   : > { %283 = vst.msk [vmem:[#allocation3 + $0x20] sm:$0x1] %vm282_vm5, %v274_v48  ;;  %v287_v49 = vpop.permute.xlu0 %286  ;;  %v1688_v48 = vpack.c.bf16 %v445_v45, %v443_v44  ;;  %v1728_v44 = vpack.c.bf16 %v485_v41, %v483_v40  ;;  %v519_v41 = vld [vmem:[%s3325_s1 + $0x500] sm:$0xff] }
  0x94   : > { %290 = vst.msk [vmem:[#allocation3 + $0x8] sm:$0xfe] %vm289_vm6, %v287_v49 }
  0x95   : > { %292 = vst.msk [vmem:[#allocation3 + $0x10] sm:$0xfe] %vm291_vm7, %v287_v49 }
  0x96   : > { %294 = vst.msk [vmem:[#allocation3 + $0x20] sm:$0x1] %vm293_vm8, %v287_v49 }
  0x97   : > { %296 = vst.msk [vmem:[#allocation3 + $0x28] sm:$0x1] %vm295_vm9, %v287_v49  ;;  %v300_v50 = vld [vmem:[#allocation3] sm:$0xfe]  ;;  %v1690_v49 = vpack.c.bf16 %v450_v47, %v448_v46 }
  0x98   : > { %v297_v58 = vld [vmem:[#allocation3] sm:$0xff]  ;;  %v319_v59 = vrot.slane %v300_v50, 1  ;;  %v447_v50 = vld [vmem:[%s3325_s1 + $0x2c0] sm:$0xff] }
  0x99   : > { %v303_v53 = vld [vmem:[#allocation3 + $0x18] sm:$0x1]  ;;  %v1692_v54 = vpack.c.bf16 %v449_v51, %v447_v50  ;;  %v306_v46 = vld [vmem:[#allocation3] sm:$0xfc] }
  0x9a   : > { %v320_v2 = vrot.slane %v303_v53, 1  ;;  %v454_v53 = vld [vmem:[%s3325_s1 + $0x2f8] sm:$0xff]  ;;  %v309_v47 = vld [vmem:[#allocation3 + $0x18] sm:$0x3]  ;;  %v492_v51 = vld [vmem:[%s3325_s1 + $0x428] sm:$0xff] }
  0x9b   : > { %v298_v63 = vld [vmem:[#allocation3 + $0x8] sm:$0xff]  ;;  %v1694_v55 = vpack.c.bf16 %v454_v53, %v452_v52  ;;  %v494_v52 = vld [vmem:[%s3325_s1 + $0x438] sm:$0xff] }
  0x9c   : > { %v308_v0 = vld [vmem:[#allocation3 + $0x10] sm:$0xfc]  ;;  %677 = vmatprep.mubr.f32.mxu0 %v298_v63  ;;  %v307_v6 = vld [vmem:[#allocation3 + $0x8] sm:$0xfc]  ;;  %v321_v22 = vsel %vm318_vm12, %v319_v59, %v320_v2 }
  0x9d   : > { %v353_v4 = vrot.slane %v308_v0, 2  ;;  %v310_v7 = vld [vmem:[#allocation3 + $0x20] sm:$0x3]  ;;  %678 = vmatmul.mubr.f32.vlgmr.msra.gmra.mrb[0].mxu0 %v297_v58  ;;  %v350_v8 = vrot.slane %v307_v6, 2  ;;  %v301_v10 = vld [vmem:[#allocation3 + $0x8] sm:$0xfe] }
  0x9e   : > { %v311_v1 = vld [vmem:[#allocation3 + $0x28] sm:$0x3]  ;;  %v351_v9 = vrot.slane %v310_v7, 2  ;;  %v304_v11 = vld [vmem:[#allocation3 + $0x20] sm:$0x1]  ;;  %v322_v13 = vrot.slane %v301_v10, 1  ;;  %1669 = vmatpush1.bf16.msra.mxu0 %v1668_v60  ;;  %v1696_v60 = vpack.c.bf16 %v453_v57, %v451_v56 }
  0x9f   : > { %v354_v5 = vrot.slane %v311_v1, 2  ;;  %v323_v14 = vrot.slane %v304_v11, 1  ;;  %v302_v18 = vld [vmem:[#allocation3 + $0x10] sm:$0xfe]  ;;  %v305_v19 = vld [vmem:[#allocation3 + $0x28] sm:$0x1]  ;;  %1671 = vmatprep.subr.bf16.mxu0 %v1670_v3 }
  0xa0   : > { %v352_v17 = vsel %vm346_vm11, %v350_v8, %v351_v9  ;;  %v325_v27 = vrot.slane %v302_v18, 1  ;;  %v326_v28 = vrot.slane %v305_v19, 1  ;;  %v456_v58 = vld [vmem:[%s3325_s1 + $0x308] sm:$0xff]  ;;  %v458_v59 = vld [vmem:[%s3325_s1 + $0x318] sm:$0xff]  ;;  %v457_v63 = vld [vmem:[%s3325_s1 + $0x310] sm:$0xff]  ;;  %v348_v56 = vrot.slane %v309_v47, 2 }
  0xa1   : > { %v355_v12 = vsel %vm346_vm11, %v353_v4, %v354_v5  ;;  %v324_v23 = vsel %vm318_vm12, %v322_v13, %v323_v14  ;;  %v1698_v61 = vpack.c.bf16 %v458_v59, %v456_v58  ;;  %v460_v0 = vld [vmem:[%s3325_s1 + $0x328] sm:$0xff]  ;;  %v462_v1 = vld [vmem:[%s3325_s1 + $0x338] sm:$0xff]  ;;  %v1700_v2 = vpack.c.bf16 %v457_v63, %v455_v62  ;;  %v459_v4 = vld [vmem:[%s3325_s1 + $0x320] sm:$0xff] }
  0xa2   : > { %1490 = vmatprep.mubr.msk.f32.mxu1 %vm334_vm10, %v355_v12  ;;  %v2027_v26 = vpack.i.bf16 %v324_v23, %v321_v22  ;;  %1673 = vmatpush1.bf16.msra.mxu0 %v1672_v15  ;;  %v327_v35 = vsel %vm318_vm12, %v325_v27, %v326_v28  ;;  %v1702_v3 = vpack.c.bf16 %v462_v1, %v460_v0  ;;  %v461_v5 = vld [vmem:[%s3325_s1 + $0x330] sm:$0xff]  ;;  %v464_v6 = vld [vmem:[%s3325_s1 + $0x348] sm:$0xff]  ;;  %v466_v7 = vld [vmem:[%s3325_s1 + $0x358] sm:$0xff] }
  0xa3   : > { %891 = vmatmul.mubr.f32.vlgmr.msra.gmra.mrb[0].mxu1 %v352_v17  ;;  %1675 = vmatprep.subr.bf16.mxu0 %v1674_v20  ;;  %v1704_v8 = vpack.c.bf16 %v461_v5, %v459_v4  ;;  %v1706_v9 = vpack.c.bf16 %v466_v7, %v464_v6  ;;  %v463_v10 = vld [vmem:[%s3325_s1 + $0x340] sm:$0xff]  ;;  %v465_v11 = vld [vmem:[%s3325_s1 + $0x350] sm:$0xff]  ;;  %v468_v12 = vld [vmem:[%s3325_s1 + $0x368] sm:$0xff]  ;;  %v1718_v27 = vpack.c.bf16 %v478_v25, %v476_v24 }
  0xa4   : > { %2028 = vrot.lane.b32.xlu1 %v2027_v26, %s2091_s11  ;;  %v470_v13 = vld [vmem:[%s3325_s1 + $0x378] sm:$0xff]  ;;  %v1708_v14 = vpack.c.bf16 %v465_v11, %v463_v10  ;;  %v469_v17 = vld [vmem:[%s3325_s1 + $0x370] sm:$0xff]  ;;  %v472_v18 = vld [vmem:[%s3325_s1 + $0x388] sm:$0xff] }
  0xa5   : > { %v1710_v15 = vpack.c.bf16 %v470_v13, %v468_v12  ;;  %v474_v19 = vld [vmem:[%s3325_s1 + $0x398] sm:$0xff]  ;;  %v1712_v20 = vpack.c.bf16 %v469_v17, %v467_v16  ;;  %v471_v22 = vld [vmem:[%s3325_s1 + $0x380] sm:$0xff]  ;;  %v473_v23 = vld [vmem:[%s3325_s1 + $0x390] sm:$0xff] }
  0xa6   : > { %1677 = vmatpush1.bf16.msra.mxu0 %v1676_v29  ;;  %v1714_v21 = vpack.c.bf16 %v474_v19, %v472_v18  ;;  %v1716_v26 = vpack.c.bf16 %v473_v23, %v471_v22  ;;  %v475_v28 = vld [vmem:[%s3325_s1 + $0x3a0] sm:$0xff]  ;;  %v477_v29 = vld [vmem:[%s3325_s1 + $0x3b0] sm:$0xff]  ;;  %v2724_v57 = vld [vmem:[#allocation3 + $0x10] sm:$0xff] }
  0xa7   : > { %1679 = vmatprep.subr.bf16.mxu0 %v1678_v30  ;;  %v480_v30 = vld [vmem:[%s3325_s1 + $0x3c8] sm:$0xff]  ;;  %v1720_v32 = vpack.c.bf16 %v477_v29, %v475_v28  ;;  %v491_v62 = vld [vmem:[%s3325_s1 + $0x420] sm:$0xff]  ;;  %v493_v63 = vld [vmem:[%s3325_s1 + $0x430] sm:$0xff] }
  0xa8   : > { %332 = vrot.lane.b32.xlu1 %v327_v35, %s2091_s11  ;;  %v1722_v33 = vpack.c.bf16 %v482_v31, %v480_v30  ;;  %v481_v35 = vld [vmem:[%s3325_s1 + $0x3d0] sm:$0xff]  ;;  %v496_v0 = vld [vmem:[%s3325_s1 + $0x448] sm:$0xff]  ;;  %v498_v1 = vld [vmem:[%s3325_s1 + $0x458] sm:$0xff] }
  0xa9   : > { %v1724_v38 = vpack.c.bf16 %v481_v35, %v479_v34  ;;  %v1738_v4 = vpack.c.bf16 %v498_v1, %v496_v0  ;;  %v495_v5 = vld [vmem:[%s3325_s1 + $0x440] sm:$0xff]  ;;  %v497_v6 = vld [vmem:[%s3325_s1 + $0x450] sm:$0xff]  ;;  %v500_v7 = vld [vmem:[%s3325_s1 + $0x468] sm:$0xff] }
  0xaa   : > { %1681 = vmatpush1.bf16.msra.mxu0 %v1680_v36  ;;  %v484_v36 = vld [vmem:[%s3325_s1 + $0x3e8] sm:$0xff]  ;;  %v499_v11 = vld [vmem:[%s3325_s1 + $0x460] sm:$0xff]  ;;  %v501_v12 = vld [vmem:[%s3325_s1 + $0x470] sm:$0xff] }
  0xab   : > { %1683 = vmatprep.subr.bf16.mxu0 %v1682_v37  ;;  %v486_v37 = vld [vmem:[%s3325_s1 + $0x3f8] sm:$0xff]  ;;  %v504_v13 = vld [vmem:[%s3325_s1 + $0x488] sm:$0xff]  ;;  %v503_v17 = vld [vmem:[%s3325_s1 + $0x480] sm:$0xff] }
  0xac   : > { %v1726_v39 = vpack.c.bf16 %v486_v37, %v484_v36  ;;  %v505_v18 = vld [vmem:[%s3325_s1 + $0x490] sm:$0xff]  ;;  %v508_v19 = vld [vmem:[%s3325_s1 + $0x4a8] sm:$0xff]  ;;  %v507_v23 = vld [vmem:[%s3325_s1 + $0x4a0] sm:$0xff] }
  0xad   : > { %v509_v24 = vld [vmem:[%s3325_s1 + $0x4b0] sm:$0xff]  ;;  %v512_v25 = vld [vmem:[%s3325_s1 + $0x4c8] sm:$0xff]  ;;  %v511_v29 = vld [vmem:[%s3325_s1 + $0x4c0] sm:$0xff] }
  0xae   : > { %1685 = vmatpush1.bf16.msra.mxu0 %v1684_v42  ;;  %v488_v42 = vld [vmem:[%s3325_s1 + $0x408] sm:$0xff]  ;;  %v513_v30 = vld [vmem:[%s3325_s1 + $0x4d0] sm:$0xff]  ;;  %v515_v35 = vld [vmem:[%s3325_s1 + $0x4e0] sm:$0xff] }
  0xaf   : > { %1687 = vmatprep.subr.bf16.mxu0 %v1686_v43  ;;  %v490_v43 = vld [vmem:[%s3325_s1 + $0x418] sm:$0xff]  ;;  %v516_v31 = vld [vmem:[%s3325_s1 + $0x4e8] sm:$0xff]  ;;  %v517_v36 = vld [vmem:[%s3325_s1 + $0x4f0] sm:$0xff] }
  0xb0   : > { %v1730_v45 = vpack.c.bf16 %v490_v43, %v488_v42  ;;  %v520_v37 = vld [vmem:[%s3325_s1 + $0x508] sm:$0xff]  ;;  %v521_v42 = vld [vmem:[%s3325_s1 + $0x510] sm:$0xff]  ;;  %v523_v47 = vld [vmem:[%s3325_s1 + $0x520] sm:$0xff] }
  0xb1   : > { %v524_v43 = vld [vmem:[%s3325_s1 + $0x528] sm:$0xff]  ;;  %v538_v1 = vld [vmem:[%s3325_s1 + $0x598] sm:$0xff] }
  0xb2   : > { %1689 = vmatpush1.bf16.msra.mxu0 %v1688_v48  ;;  %v487_v48 = vld [vmem:[%s3325_s1 + $0x400] sm:$0xff]  ;;  %v536_v0 = vld [vmem:[%s3325_s1 + $0x588] sm:$0xff] }
  0xb3   : > { %1691 = vmatprep.subr.bf16.mxu0 %v1690_v49  ;;  %v489_v49 = vld [vmem:[%s3325_s1 + $0x410] sm:$0xff] }
  0xb4   : > { %v1732_v58 = vpack.c.bf16 %v489_v49, %v487_v48  ;;  %v525_v48 = vld [vmem:[%s3325_s1 + $0x530] sm:$0xff]  ;;  %v528_v49 = vld [vmem:[%s3325_s1 + $0x548] sm:$0xff] }
  0xb6   : > { %1693 = vmatpush1.bf16.msra.mxu0 %v1692_v54 }
  0xb7   : > { %1695 = vmatprep.subr.bf16.mxu0 %v1694_v55  ;;  %v347_v55 = vrot.slane %v306_v46, 2 }
  0xba   : > { %1697 = vmatpush1.bf16.msra.mxu0 %v1696_v60 }
  0xbb   : > { %1699 = vmatprep.subr.bf16.mxu0 %v1698_v61  ;;  %v1734_v61 = vpack.c.bf16 %v494_v52, %v492_v51  ;;  %v530_v51 = vld [vmem:[%s3325_s1 + $0x558] sm:$0xff]  ;;  %v1768_v52 = vpack.c.bf16 %v525_v48, %v523_v47  ;;  %v984_v48 = vld [vmem:[%s3326_s2 + $0x30] sm:$0xff] }
  0xbe   : > { %1701 = vmatpush1.bf16.msra.mxu0 %v1700_v2  ;;  %v349_v2 = vsel %vm346_vm11, %v347_v55, %v348_v56  ;;  %v527_v55 = vld [vmem:[%s3325_s1 + $0x540] sm:$0xff]  ;;  %v529_v56 = vld [vmem:[%s3325_s1 + $0x550] sm:$0xff] }
  0xbf   : > { %1703 = vmatprep.subr.bf16.mxu0 %v1702_v3  ;;  %v1736_v3 = vpack.c.bf16 %v493_v63, %v491_v62  ;;  %v531_v62 = vld [vmem:[%s3325_s1 + $0x560] sm:$0xff]  ;;  %v533_v63 = vld [vmem:[%s3325_s1 + $0x570] sm:$0xff] }
  0xc2   : > { %1705 = vmatpush1.bf16.msra.mxu0 %v1704_v8  ;;  %v502_v8 = vld [vmem:[%s3325_s1 + $0x478] sm:$0xff] }
  0xc3   : > { %1707 = vmatprep.subr.bf16.mxu0 %v1706_v9  ;;  %v1740_v9 = vpack.c.bf16 %v497_v6, %v495_v5  ;;  %v1742_v10 = vpack.c.bf16 %v502_v8, %v500_v7  ;;  %v537_v5 = vld [vmem:[%s3325_s1 + $0x590] sm:$0xff]  ;;  %v540_v6 = vld [vmem:[%s3325_s1 + $0x5a8] sm:$0xff]  ;;  %v542_v7 = vld [vmem:[%s3325_s1 + $0x5b8] sm:$0xff] }
  0xc6   : > { %1709 = vmatpush1.bf16.msra.mxu0 %v1708_v14  ;;  %v506_v14 = vld [vmem:[%s3325_s1 + $0x498] sm:$0xff] }
  0xc7   : > { %1711 = vmatprep.subr.bf16.mxu0 %v1710_v15  ;;  %v1744_v15 = vpack.c.bf16 %v501_v12, %v499_v11  ;;  %v1746_v16 = vpack.c.bf16 %v506_v14, %v504_v13  ;;  %v541_v11 = vld [vmem:[%s3325_s1 + $0x5b0] sm:$0xff]  ;;  %v544_v12 = vld [vmem:[%s3325_s1 + $0x5c8] sm:$0xff]  ;;  %v546_v13 = vld [vmem:[%s3325_s1 + $0x5d8] sm:$0xff] }
  0xca   : > { %1713 = vmatpush1.bf16.msra.mxu0 %v1712_v20  ;;  %v510_v20 = vld [vmem:[%s3325_s1 + $0x4b8] sm:$0xff] }
  0xcb   : > { %1715 = vmatprep.subr.bf16.mxu0 %v1714_v21  ;;  %v1748_v21 = vpack.c.bf16 %v505_v18, %v503_v17  ;;  %v1750_v22 = vpack.c.bf16 %v510_v20, %v508_v19  ;;  %v545_v17 = vld [vmem:[%s3325_s1 + $0x5d0] sm:$0xff]  ;;  %v548_v18 = vld [vmem:[%s3325_s1 + $0x5e8] sm:$0xff]  ;;  %v550_v19 = vld [vmem:[%s3325_s1 + $0x5f8] sm:$0xff] }
  0xce   : > { %1717 = vmatpush1.bf16.msra.mxu0 %v1716_v26  ;;  %v514_v26 = vld [vmem:[%s3325_s1 + $0x4d8] sm:$0xff] }
  0xcf   : > { %1719 = vmatprep.subr.bf16.mxu0 %v1718_v27  ;;  %v1752_v27 = vpack.c.bf16 %v509_v24, %v507_v23  ;;  %v1754_v28 = vpack.c.bf16 %v514_v26, %v512_v25  ;;  %v549_v23 = vld [vmem:[%s3325_s1 + $0x5f0] sm:$0xff] }
  0xd2   : > { %1721 = vmatpush1.bf16.msra.mxu0 %v1720_v32  ;;  %v518_v32 = vld [vmem:[%s3325_s1 + $0x4f8] sm:$0xff] }
  0xd3   : > { %1723 = vmatprep.subr.bf16.mxu0 %v1722_v33  ;;  %v1756_v33 = vpack.c.bf16 %v513_v30, %v511_v29  ;;  %v1758_v34 = vpack.c.bf16 %v518_v32, %v516_v31  ;;  %v994_v29 = vld [vmem:[%s3326_s2 + $0x80] sm:$0xff]  ;;  %v995_v30 = vld [vmem:[%s3326_s2 + $0x88] sm:$0xff] }
  0xd4   : > { %v978_v31 = vld [vmem:[%s3326_s2] sm:$0xff]  ;;  %v1842_v32 = vpack.c.bf16 %v995_v30, %v994_v29 }
  0xd6   : > { %1725 = vmatpush1.bf16.msra.mxu0 %v1724_v38  ;;  %v522_v38 = vld [vmem:[%s3325_s1 + $0x518] sm:$0xff]  ;;  %1843 = vmatprep.subr.bf16.mxu1 %v1842_v32 }
  0xd7   : > { %1727 = vmatprep.subr.bf16.mxu0 %v1726_v39  ;;  %v1760_v39 = vpack.c.bf16 %v517_v36, %v515_v35  ;;  %v1762_v40 = vpack.c.bf16 %v522_v38, %v520_v37  ;;  %v980_v36 = vld [vmem:[%s3326_s2 + $0x10] sm:$0xff]  ;;  %v981_v37 = vld [vmem:[%s3326_s2 + $0x18] sm:$0xff]  ;;  %v998_v38 = vld [vmem:[%s3326_s2 + $0xa0] sm:$0xff] }
  0xda   : > { %1729 = vmatpush1.bf16.msra.mxu0 %v1728_v44  ;;  %v526_v44 = vld [vmem:[%s3325_s1 + $0x538] sm:$0xff] }
  0xdb   : > { %1731 = vmatprep.subr.bf16.mxu0 %v1730_v45  ;;  %v1764_v45 = vpack.c.bf16 %v521_v42, %v519_v41  ;;  %v1766_v46 = vpack.c.bf16 %v526_v44, %v524_v43  ;;  %v982_v42 = vld [vmem:[%s3326_s2 + $0x20] sm:$0xff]  ;;  %v983_v43 = vld [vmem:[%s3326_s2 + $0x28] sm:$0xff]  ;;  %v1000_v44 = vld [vmem:[%s3326_s2 + $0xb0] sm:$0xff] }
 0x116   : > { %v2714_v50 = vpop.permute.xlu1 %2028 }
 0x117   : > { %v2031_v53 = vunpack.i.h.bf16 %v2714_v50  ;;  %v2030_v54 = vunpack.i.l.bf16 %v2714_v50  ;;  %v979_v50 = vld [vmem:[%s3326_s2 + $0x8] sm:$0xff] }
 0x119   : > { %v335_v59 = vsel %vm334_vm10, %v2030_v54, %v2031_v53  ;;  %v358_v60 = vsel %vm334_vm10, %v2724_v57, %v2030_v54  ;;  %v1770_v54 = vpack.c.bf16 %v530_v51, %v528_v49  ;;  %v985_v49 = vld [vmem:[%s3326_s2 + $0x38] sm:$0xff]  ;;  %v1002_v51 = vld [vmem:[%s3326_s2 + $0xc0] sm:$0xff] }
 0x11a   : > { %748 = vmatprep.mubr.f32.mxu0 %v335_v59  ;;  %v534_v59 = vld [vmem:[%s3325_s1 + $0x578] sm:$0xff]  ;;  %v333_v25 = vpop.permute.xlu1 %332 }
 0x11b   : > { %749 = vmatmul.mubr.f32.vlgmr.msra.gmra.mrb[0].mxu0 %v358_v60  ;;  %v1772_v60 = vpack.c.bf16 %v529_v56, %v527_v55  ;;  %v336_v26 = vsel %vm334_vm10, %v2031_v53, %v333_v25  ;;  %v996_v53 = vld [vmem:[%s3326_s2 + $0x90] sm:$0xff]  ;;  %v986_v56 = vld [vmem:[%s3326_s2 + $0x40] sm:$0xff]  ;;  %v1009_v25 = vld [vmem:[%s3326_s2 + $0xf8] sm:$0xff] }
 0x11c   : > { %1733 = vmatpush1.bf16.msra.mxu0 %v1732_v58  ;;  %819 = vmatprep.mubr.f32.mxu0 %v349_v2  ;;  %v532_v58 = vld [vmem:[%s3325_s1 + $0x568] sm:$0xff]  ;;  %v1776_v2 = vpack.c.bf16 %v533_v63, %v531_v62  ;;  %v988_v63 = vld [vmem:[%s3326_s2 + $0x50] sm:$0xff] }
 0x11d   : > { %1735 = vmatprep.subr.bf16.mxu0 %v1734_v61  ;;  %v1774_v61 = vpack.c.bf16 %v534_v59, %v532_v58  ;;  %v987_v58 = vld [vmem:[%s3326_s2 + $0x48] sm:$0xff]  ;;  %v1004_v59 = vld [vmem:[%s3326_s2 + $0xd0] sm:$0xff] }
 0x120   : > { %1737 = vmatpush1.bf16.msra.mxu0 %v1736_v3  ;;  %v1778_v3 = vpack.c.bf16 %v538_v1, %v536_v0  ;;  %v989_v0 = vld [vmem:[%s3326_s2 + $0x58] sm:$0xff] }
 0x121   : > { %1739 = vmatprep.subr.bf16.mxu0 %v1738_v4  ;;  %v535_v4 = vld [vmem:[%s3325_s1 + $0x580] sm:$0xff]  ;;  %v1864_v1 = vpack.c.bf16 %v989_v0, %v988_v63 }
 0x122   : > { %v1780_v8 = vpack.c.bf16 %v537_v5, %v535_v4  ;;  %v599_v5 = vld [vmem:[%s3327_s3] sm:$0x3] }
 0x124   : > { %1741 = vmatpush1.bf16.msra.mxu0 %v1740_v9  ;;  %v1782_v9 = vpack.c.bf16 %v542_v7, %v540_v6 }
 0x125   : > { %1743 = vmatprep.subr.bf16.mxu0 %v1742_v10  ;;  %v539_v10 = vld [vmem:[%s3325_s1 + $0x5a0] sm:$0xff] }
 0x126   : > { %v1784_v14 = vpack.c.bf16 %v541_v11, %v539_v10 }
 0x128   : > { %1745 = vmatpush1.bf16.msra.mxu0 %v1744_v15  ;;  %v1786_v15 = vpack.c.bf16 %v546_v13, %v544_v12 }
 0x129   : > { %1747 = vmatprep.subr.bf16.mxu0 %v1746_v16  ;;  %v543_v16 = vld [vmem:[%s3325_s1 + $0x5c0] sm:$0xff] }
 0x12a   : > { %v1788_v20 = vpack.c.bf16 %v545_v17, %v543_v16 }
 0x12c   : > { %1749 = vmatpush1.bf16.msra.mxu0 %v1748_v21  ;;  %v1790_v21 = vpack.c.bf16 %v550_v19, %v548_v18  ;;  %v1006_v18 = vld [vmem:[%s3326_s2 + $0xe0] sm:$0xff]  ;;  %v1007_v19 = vld [vmem:[%s3326_s2 + $0xe8] sm:$0xff] }
 0x12d   : > { %1751 = vmatprep.subr.bf16.mxu0 %v1750_v22  ;;  %v547_v22 = vld [vmem:[%s3325_s1 + $0x5e0] sm:$0xff] }
 0x12e   : > { %v1792_v24 = vpack.c.bf16 %v549_v23, %v547_v22  ;;  %v991_v22 = vld [vmem:[%s3326_s2 + $0x68] sm:$0xff] }
 0x130   : > { %1753 = vmatpush1.bf16.msra.mxu0 %v1752_v27 }
 0x131   : > { %1755 = vmatprep.subr.bf16.mxu0 %v1754_v28 }
 0x134   : > { %1757 = vmatpush1.bf16.msra.mxu0 %v1756_v33  ;;  %v997_v33 = vld [vmem:[%s3326_s2 + $0x98] sm:$0xff] }
 0x135   : > { %1759 = vmatprep.subr.bf16.mxu0 %v1758_v34  ;;  %v1844_v34 = vpack.c.bf16 %v979_v50, %v978_v31  ;;  %v1846_v35 = vpack.c.bf16 %v997_v33, %v996_v53  ;;  %v3010_v31 = vld [vmem:[#allocation2] sm:$0xff]  ;;  %v924_v50 = vld [vmem:[#allocation3 + $0x10] sm:$0xfe]  ;;  %v927_v53 = vld [vmem:[#allocation3 + $0x28] sm:$0x1] }
 0x137   : > { %1845 = vmatpush3.bf16.msra.mxu1 %v1844_v34  ;;  %v946_v34 = vrot.slane %v924_v50, 1  ;;  %v1040_v50 = vld [vmem:[%s3326_s2 + $0x1f0] sm:$0xff] }
 0x138   : > { %1761 = vmatpush1.bf16.msra.mxu0 %v1760_v39  ;;  %v999_v39 = vld [vmem:[%s3326_s2 + $0xa8] sm:$0xff]  ;;  %1847 = vmatprep.subr.bf16.mxu1 %v1846_v35  ;;  %v947_v35 = vrot.slane %v927_v53, 1  ;;  %v1041_v53 = vld [vmem:[%s3326_s2 + $0x1f8] sm:$0xff] }
 0x139   : > { %1763 = vmatprep.subr.bf16.mxu0 %v1762_v40  ;;  %v1848_v40 = vpack.c.bf16 %v981_v37, %v980_v36  ;;  %v1850_v41 = vpack.c.bf16 %v999_v39, %v998_v38  ;;  %v1026_v36 = vld [vmem:[%s3326_s2 + $0x180] sm:$0xff]  ;;  %v1027_v37 = vld [vmem:[%s3326_s2 + $0x188] sm:$0xff] }
 0x13a   : > { %v1874_v38 = vpack.c.bf16 %v1027_v37, %v1026_v36  ;;  %v948_v39 = vsel %vm318_vm12, %v946_v34, %v947_v35  ;;  %v1902_v34 = vpack.c.bf16 %v1041_v53, %v1040_v50  ;;  %v1024_v35 = vld [vmem:[%s3326_s2 + $0x170] sm:$0xff]  ;;  %v1025_v36 = vld [vmem:[%s3326_s2 + $0x178] sm:$0xff]  ;;  %v1058_v37 = vld [vmem:[%s3326_s2 + $0x280] sm:$0xff] }
 0x13b   : > { %1849 = vmatpush3.bf16.msra.mxu1 %v1848_v40  ;;  %v1056_v50 = vld [vmem:[%s3326_s2 + $0x270] sm:$0xff]  ;;  %v1057_v53 = vld [vmem:[%s3326_s2 + $0x278] sm:$0xff] }
 0x13c   : > { %1765 = vmatpush1.bf16.msra.mxu0 %v1764_v45  ;;  %v1001_v45 = vld [vmem:[%s3326_s2 + $0xb8] sm:$0xff]  ;;  %1851 = vmatprep.subr.bf16.mxu1 %v1850_v41  ;;  %v1010_v41 = vld [vmem:[%s3326_s2 + $0x100] sm:$0xff] }
 0x13d   : > { %1767 = vmatprep.subr.bf16.mxu0 %v1766_v46  ;;  %v1852_v46 = vpack.c.bf16 %v983_v43, %v982_v42  ;;  %v1854_v47 = vpack.c.bf16 %v1001_v45, %v1000_v44  ;;  %v1011_v42 = vld [vmem:[%s3326_s2 + $0x108] sm:$0xff]  ;;  %v1028_v43 = vld [vmem:[%s3326_s2 + $0x190] sm:$0xff]  ;;  %v1029_v44 = vld [vmem:[%s3326_s2 + $0x198] sm:$0xff] }
 0x13e   : > { %v1012_v45 = vld [vmem:[%s3326_s2 + $0x110] sm:$0xff] }
 0x13f   : > { %1853 = vmatpush3.bf16.msra.mxu1 %v1852_v46  ;;  %v1876_v46 = vpack.c.bf16 %v1011_v42, %v1010_v41 }
 0x140   : > { %1769 = vmatpush1.bf16.msra.mxu0 %v1768_v52  ;;  %v1003_v52 = vld [vmem:[%s3326_s2 + $0xc8] sm:$0xff]  ;;  %1855 = vmatprep.subr.bf16.mxu1 %v1854_v47  ;;  %v1013_v47 = vld [vmem:[%s3326_s2 + $0x118] sm:$0xff] }
 0x141   : > { %1771 = vmatprep.subr.bf16.mxu0 %v1770_v54  ;;  %v1856_v54 = vpack.c.bf16 %v985_v49, %v984_v48  ;;  %v1858_v55 = vpack.c.bf16 %v1003_v52, %v1002_v51  ;;  %v1030_v48 = vld [vmem:[%s3326_s2 + $0x1a0] sm:$0xff]  ;;  %v1031_v49 = vld [vmem:[%s3326_s2 + $0x1a8] sm:$0xff]  ;;  %v1880_v0 = vpack.c.bf16 %v1013_v47, %v1012_v45  ;;  %v1061_v47 = vld [vmem:[%s3326_s2 + $0x298] sm:$0xff] }
 0x143   : > { %1857 = vmatpush3.bf16.msra.mxu1 %v1856_v54 }
 0x144   : > { %1773 = vmatpush1.bf16.msra.mxu0 %v1772_v60  ;;  %v1005_v60 = vld [vmem:[%s3326_s2 + $0xd8] sm:$0xff]  ;;  %1859 = vmatprep.subr.bf16.mxu1 %v1858_v55  ;;  %v1878_v55 = vpack.c.bf16 %v1029_v44, %v1028_v43  ;;  %v1042_v43 = vld [vmem:[%s3326_s2 + $0x200] sm:$0xff]  ;;  %v1043_v44 = vld [vmem:[%s3326_s2 + $0x208] sm:$0xff] }
 0x145   : > { %1775 = vmatprep.subr.bf16.mxu0 %v1774_v61  ;;  %v1860_v61 = vpack.c.bf16 %v987_v58, %v986_v56  ;;  %v1862_v62 = vpack.c.bf16 %v1005_v60, %v1004_v59 }
 0x147   : > { %1861 = vmatpush3.bf16.msra.mxu1 %v1860_v61 }
 0x148   : > { %1777 = vmatpush1.bf16.msra.mxu0 %v1776_v2  ;;  %1863 = vmatprep.subr.bf16.mxu1 %v1862_v62  ;;  %v601_v2 = vlaneseq }
 0x149   : > { %1779 = vmatprep.subr.bf16.mxu0 %v1778_v3 }
 0x14a   : > { %v602_v3 = vshrl.u32 %v601_v2, 7 }
 0x14b   : > { %1865 = vmatpush3.bf16.msra.mxu1 %v1864_v1 }
 0x14c   : > { %1781 = vmatpush1.bf16.msra.mxu0 %v1780_v8  ;;  %v603_v4 = vsub.s32 0, %v602_v3  ;;  %v607_v6 = vsub.s32 1, %v602_v3  ;;  %v1882_v3 = vpack.c.bf16 %v1031_v49, %v1030_v48 }
 0x14d   : > { %1783 = vmatprep.subr.bf16.mxu0 %v1782_v9 }
 0x14e   : > { %v604_v7 = vrot.slane %v599_v5, %v603_v4  ;;  %v608_v8 = vrot.slane %v599_v5, %v607_v6  ;;  %v1014_v4 = vld [vmem:[%s3326_s2 + $0x120] sm:$0xff]  ;;  %v1015_v5 = vld [vmem:[%s3326_s2 + $0x128] sm:$0xff] }
 0x150   : > { %1785 = vmatpush1.bf16.msra.mxu0 %v1784_v14 }
 0x151   : > { %1787 = vmatprep.subr.bf16.mxu0 %v1786_v15 }
 0x154   : > { %1789 = vmatpush1.bf16.msra.mxu0 %v1788_v20  ;;  %v990_v20 = vld [vmem:[%s3326_s2 + $0x60] sm:$0xff] }
 0x155   : > { %1791 = vmatprep.subr.bf16.mxu0 %v1790_v21  ;;  %v1866_v21 = vpack.c.bf16 %v1007_v19, %v1006_v18  ;;  %v1868_v23 = vpack.c.bf16 %v991_v22, %v990_v20  ;;  %v1018_v18 = vld [vmem:[%s3326_s2 + $0x140] sm:$0xff]  ;;  %v1019_v19 = vld [vmem:[%s3326_s2 + $0x148] sm:$0xff]  ;;  %v1036_v20 = vld [vmem:[%s3326_s2 + $0x1d0] sm:$0xff] }
 0x156   : > { %v1892_v22 = vpack.c.bf16 %v1019_v19, %v1018_v18 }
 0x157   : > { %1867 = vmatprep.subr.bf16.mxu1 %v1866_v21  ;;  %v1037_v21 = vld [vmem:[%s3326_s2 + $0x1d8] sm:$0xff] }
 0x158   : > { %1793 = vmatpush1.bf16.msra.mxu0 %v1792_v24  ;;  %v1008_v24 = vld [vmem:[%s3326_s2 + $0xf0] sm:$0xff]  ;;  %1869 = vmatpush3.bf16.msra.mxu1 %v1868_v23  ;;  %v1894_v23 = vpack.c.bf16 %v1037_v21, %v1036_v20  ;;  %v1053_v21 = vld [vmem:[%s3326_s2 + $0x258] sm:$0xff] }
 0x159   : > { %v1052_v20 = vld [vmem:[%s3326_s2 + $0x250] sm:$0xff] }
 0x15b   : > { %820 = vmatmul.mubr.f32.vlgmr.msra.gmra.mrb[0].mxu0 %v336_v26  ;;  %v992_v26 = vld [vmem:[%s3326_s2 + $0x70] sm:$0xff] }
 0x176   : > { %v892_v27 = vpop.f32.mrb[0].mxu1 }
 0x177   : > { %v894_v28 = vpop.f32.mrb[1].mxu1 }
 0x22e   : > { %v821_v9 = vpop.f32.mrb[0].mxu0 }
 0x22f   : > { %v1974_v10 = vadd.f32 %v821_v9, %v604_v7  ;;  %v823_v11 = vpop.f32.mrb[1].mxu0  ;;  %v1032_v7 = vld [vmem:[%s3326_s2 + $0x1b0] sm:$0xff]  ;;  %v1884_v9 = vpack.c.bf16 %v1015_v5, %v1014_v4  ;;  %v1065_v4 = vld [vmem:[%s3326_s2 + $0x2b8] sm:$0xff] }
 0x230   : > { %v1976_v12 = vadd.f32 %v823_v11, %v608_v8  ;;  %v1033_v8 = vld [vmem:[%s3326_s2 + $0x1b8] sm:$0xff]  ;;  %v1016_v11 = vld [vmem:[%s3326_s2 + $0x130] sm:$0xff] }
 0x231   : > { %v2984_v13 = vadd.f32 %v1974_v10, %v892_v27  ;;  %v1870_v27 = vpack.c.bf16 %v1009_v25, %v1008_v24  ;;  %v1886_v10 = vpack.c.bf16 %v1033_v8, %v1032_v7  ;;  %v1020_v24 = vld [vmem:[%s3326_s2 + $0x150] sm:$0xff]  ;;  %v1021_v25 = vld [vmem:[%s3326_s2 + $0x158] sm:$0xff] }
 0x232   : > { %v1977_v14 = vadd.f32 %v1976_v12, %v894_v28  ;;  %v993_v28 = vld [vmem:[%s3326_s2 + $0x78] sm:$0xff]  ;;  %v1048_v7 = vld [vmem:[%s3326_s2 + $0x230] sm:$0xff] }
 0x233   : > { %v1872_v29 = vpack.c.bf16 %v993_v28, %v992_v26  ;;  %1871 = vmatprep.subr.bf16.mxu1 %v1870_v27  ;;  %v1017_v12 = vld [vmem:[%s3326_s2 + $0x138] sm:$0xff]  ;;  %v1038_v26 = vld [vmem:[%s3326_s2 + $0x1e0] sm:$0xff]  ;;  %v1039_v27 = vld [vmem:[%s3326_s2 + $0x1e8] sm:$0xff]  ;;  %v1896_v28 = vpack.c.bf16 %v1021_v25, %v1020_v24  ;;  %v1928_v24 = vpack.c.bf16 %v1053_v21, %v1052_v20 }
 0x234   : > { %v1492_v15 = vmul.f32 -1.442695, %v1977_v14  ;;  %v1034_v14 = vld [vmem:[%s3326_s2 + $0x1c0] sm:$0xff]  ;;  %v1049_v8 = vld [vmem:[%s3326_s2 + $0x238] sm:$0xff] }
 0x235   : > { %1873 = vmatpush3.bf16.msra.mxu1 %v1872_v29  ;;  %v1898_v29 = vpack.c.bf16 %v1039_v27, %v1038_v26  ;;  %v1054_v26 = vld [vmem:[%s3326_s2 + $0x260] sm:$0xff]  ;;  %v1055_v27 = vld [vmem:[%s3326_s2 + $0x268] sm:$0xff] }
 0x236   : > { %2037 = vpow2.f32 %v1492_v15  ;;  %1875 = vmatprep.subr.bf16.mxu1 %v1874_v38  ;;  %v1035_v15 = vld [vmem:[%s3326_s2 + $0x1c8] sm:$0xff] }
 0x237   : > { %v1059_v38 = vld [vmem:[%s3326_s2 + $0x288] sm:$0xff] }
 0x240   : > { %v2038_v16 = vpop.eup %2037 }
 0x241   : > { %v904_v17 = vadd.f32 1.0, %v2038_v16  ;;  %v1888_v16 = vpack.c.bf16 %v1017_v12, %v1016_v11  ;;  %v1920_v11 = vpack.c.bf16 %v1049_v8, %v1048_v7  ;;  %v1092_v7 = vld [vmem:[%s3326_s2 + $0x390] sm:$0xff]  ;;  %v1093_v8 = vld [vmem:[%s3326_s2 + $0x398] sm:$0xff] }
 0x243   : > { %2039 = vrcp.f32 %v904_v17  ;;  %v1890_v17 = vpack.c.bf16 %v1035_v15, %v1034_v14  ;;  %v1050_v14 = vld [vmem:[%s3326_s2 + $0x240] sm:$0xff]  ;;  %v1051_v15 = vld [vmem:[%s3326_s2 + $0x248] sm:$0xff] }
 0x244   : > { %v1924_v18 = vpack.c.bf16 %v1051_v15, %v1050_v14  ;;  %v1096_v14 = vld [vmem:[%s3326_s2 + $0x3b0] sm:$0xff]  ;;  %v1097_v15 = vld [vmem:[%s3326_s2 + $0x3b8] sm:$0xff] }
 0x24d   : > { %v2040_v30 = vpop.eup %2039 }
 0x24e   : > { %v909_v32 = vmul.f32 %v3010_v31, %v2040_v30  ;;  %v1022_v30 = vld [vmem:[%s3326_s2 + $0x160] sm:$0xff] }
 0x250   : > { %v911_v33 = vrot.slane %v909_v32, 7  ;;  %v1023_v32 = vld [vmem:[%s3326_s2 + $0x168] sm:$0xff] }
 0x252   : > { %912 = vrot.lane.b32.xlu0 %v911_v33, %s2089_s29  ;;  %v1900_v33 = vpack.c.bf16 %v1023_v32, %v1022_v30  ;;  %v1932_v30 = vpack.c.bf16 %v1055_v27, %v1054_v26 }
 0x256   : > { %953 = vrot.lane.b32.xlu0 %v948_v39, %s2091_s11  ;;  %v1904_v39 = vpack.c.bf16 %v1025_v36, %v1024_v35  ;;  %v933_v35 = vld [vmem:[#allocation3 + $0x28] sm:$0x3]  ;;  %v1074_v36 = vld [vmem:[%s3326_s2 + $0x300] sm:$0xff] }
 0x2c4   : > { %v913_v40 = vpop.permute.xlu0 %912 }
 0x2c5   : > { %915 = vst.msk [vmem:[#allocation3] sm:$0xfe] %vm276_vm2, %v913_v40 }
 0x2c6   : > { %916 = vst.msk [vmem:[#allocation3 + $0x8] sm:$0xfe] %vm278_vm3, %v913_v40 }
 0x2c7   : > { %917 = vst.msk [vmem:[#allocation3 + $0x18] sm:$0x1] %vm280_vm4, %v913_v40 }
 0x2c8   : > { %918 = vst.msk [vmem:[#allocation3 + $0x20] sm:$0x1] %vm282_vm5, %v913_v40  ;;  %v1906_v40 = vpack.c.bf16 %v1059_v38, %v1058_v37  ;;  %v1075_v37 = vld [vmem:[%s3326_s2 + $0x308] sm:$0xff] }
 0x2cc   : > { %v919_v52 = vld [vmem:[#allocation3] sm:$0xff] }
 0x2cd   : > { %v920_v51 = vld [vmem:[#allocation3 + $0x8] sm:$0xff]  ;;  %v922_v54 = vld [vmem:[#allocation3] sm:$0xfe] }
 0x2ce   : > { %1171 = vmatprep.mubr.f32.mxu1 %v920_v51  ;;  %v923_v56 = vld [vmem:[#allocation3 + $0x8] sm:$0xfe]  ;;  %v925_v58 = vld [vmem:[#allocation3 + $0x18] sm:$0x1]  ;;  %v940_v60 = vrot.slane %v922_v54, 1  ;;  %v1908_v54 = vpack.c.bf16 %v1043_v44, %v1042_v43  ;;  %v1077_v44 = vld [vmem:[%s3326_s2 + $0x318] sm:$0xff] }
 0x2cf   : > { %v926_v59 = vld [vmem:[#allocation3 + $0x20] sm:$0x1]  ;;  %1172 = vmatmul.mubr.f32.vlgmr.msra.gmra.mrb[2].mxu1 %v919_v52  ;;  %v941_v61 = vrot.slane %v925_v58, 1  ;;  %v943_v62 = vrot.slane %v923_v56, 1  ;;  %v928_v41 = vld [vmem:[#allocation3] sm:$0xfc] }
 0x2d0   : > { %v944_v63 = vrot.slane %v926_v59, 1  ;;  %1877 = vmatpush3.bf16.msra.mxu1 %v1876_v46  ;;  %v931_v42 = vld [vmem:[#allocation3 + $0x18] sm:$0x3]  ;;  %v1060_v46 = vld [vmem:[%s3326_s2 + $0x290] sm:$0xff]  ;;  %v966_v51 = vrot.slane %v928_v41, 2  ;;  %v954_v41 = vpop.permute.xlu0 %953 }
 0x2d1   : > { %v942_v1 = vsel %vm318_vm12, %v940_v60, %v941_v61  ;;  %1879 = vmatprep.subr.bf16.mxu1 %v1878_v55  ;;  %v967_v52 = vrot.slane %v931_v42, 2  ;;  %v1910_v58 = vpack.c.bf16 %v1061_v47, %v1060_v46  ;;  %v1044_v59 = vld [vmem:[%s3326_s2 + $0x210] sm:$0xff]  ;;  %v1045_v60 = vld [vmem:[%s3326_s2 + $0x218] sm:$0xff]  ;;  %v1062_v61 = vld [vmem:[%s3326_s2 + $0x2a0] sm:$0xff]  ;;  %v2092_v42 = vmov 0.0|0.0  }
 0x2d2   : > { %v945_v2 = vsel %vm318_vm12, %v943_v62, %v944_v63  ;;  %v1063_v62 = vld [vmem:[%s3326_s2 + $0x2a8] sm:$0xff]  ;;  %v1912_v63 = vpack.c.bf16 %v1045_v60, %v1044_v59  ;;  %v1076_v43 = vld [vmem:[%s3326_s2 + $0x310] sm:$0xff] }
 0x2d3   : > { %v2032_v6 = vpack.i.bf16 %v945_v2, %v942_v1  ;;  %v1046_v1 = vld [vmem:[%s3326_s2 + $0x220] sm:$0xff]  ;;  %v1047_v2 = vld [vmem:[%s3326_s2 + $0x228] sm:$0xff]  ;;  %v1084_v60 = vld [vmem:[%s3326_s2 + $0x350] sm:$0xff] }
 0x2d4   : > { %1881 = vmatpush3.bf16.msra.mxu1 %v1880_v0  ;;  %v1914_v0 = vpack.c.bf16 %v1063_v62, %v1062_v61  ;;  %v1916_v5 = vpack.c.bf16 %v1047_v2, %v1046_v1  ;;  %v1085_v61 = vld [vmem:[%s3326_s2 + $0x358] sm:$0xff]  ;;  %v1088_v1 = vld [vmem:[%s3326_s2 + $0x370] sm:$0xff] }
 0x2d5   : > { %2033 = vrot.lane.b32.xlu1 %v2032_v6, %s2091_s11  ;;  %1883 = vmatprep.subr.bf16.mxu1 %v1882_v3  ;;  %v1064_v3 = vld [vmem:[%s3326_s2 + $0x2b0] sm:$0xff]  ;;  %v1954_v62 = vpack.c.bf16 %v1085_v61, %v1084_v60  ;;  %v1089_v2 = vld [vmem:[%s3326_s2 + $0x378] sm:$0xff] }
 0x2d6   : > { %v1918_v6 = vpack.c.bf16 %v1065_v4, %v1064_v3  ;;  %v1960_v3 = vpack.c.bf16 %v1089_v2, %v1088_v1  ;;  %v1090_v4 = vld [vmem:[%s3326_s2 + $0x380] sm:$0xff] }
 0x2d8   : > { %1885 = vmatpush3.bf16.msra.mxu1 %v1884_v9  ;;  %v1066_v9 = vld [vmem:[%s3326_s2 + $0x2c0] sm:$0xff] }
 0x2d9   : > { %1887 = vmatprep.subr.bf16.mxu1 %v1886_v10  ;;  %v1067_v10 = vld [vmem:[%s3326_s2 + $0x2c8] sm:$0xff] }
 0x2da   : > { %v1922_v12 = vpack.c.bf16 %v1067_v10, %v1066_v9  ;;  %v1966_v9 = vpack.c.bf16 %v1093_v8, %v1092_v7  ;;  %v1094_v10 = vld [vmem:[%s3326_s2 + $0x3a0] sm:$0xff] }
 0x2dc   : > { %1889 = vmatpush3.bf16.msra.mxu1 %v1888_v16  ;;  %v1068_v16 = vld [vmem:[%s3326_s2 + $0x2d0] sm:$0xff] }
 0x2dd   : > { %1891 = vmatprep.subr.bf16.mxu1 %v1890_v17  ;;  %v1069_v17 = vld [vmem:[%s3326_s2 + $0x2d8] sm:$0xff] }
 0x2de   : > { %v1926_v19 = vpack.c.bf16 %v1069_v17, %v1068_v16  ;;  %v929_v16 = vld [vmem:[#allocation3 + $0x8] sm:$0xfc]  ;;  %v932_v17 = vld [vmem:[#allocation3 + $0x20] sm:$0x3] }
 0x2df   : > { %v970_v20 = vrot.slane %v932_v17, 2 }
 0x2e0   : > { %1893 = vmatpush3.bf16.msra.mxu1 %v1892_v22  ;;  %v1070_v22 = vld [vmem:[%s3326_s2 + $0x2e0] sm:$0xff] }
 0x2e1   : > { %1895 = vmatprep.subr.bf16.mxu1 %v1894_v23  ;;  %v1071_v23 = vld [vmem:[%s3326_s2 + $0x2e8] sm:$0xff] }
 0x2e2   : > { %v1930_v25 = vpack.c.bf16 %v1071_v23, %v1070_v22 }
 0x2e4   : > { %1897 = vmatpush3.bf16.msra.mxu1 %v1896_v28  ;;  %v1072_v28 = vld [vmem:[%s3326_s2 + $0x2f0] sm:$0xff] }
 0x2e5   : > { %1899 = vmatprep.subr.bf16.mxu1 %v1898_v29  ;;  %v1073_v29 = vld [vmem:[%s3326_s2 + $0x2f8] sm:$0xff] }
 0x2e6   : > { %v1934_v32 = vpack.c.bf16 %v1073_v29, %v1072_v28 }
 0x2e8   : > { %1901 = vmatpush3.bf16.msra.mxu1 %v1900_v33  ;;  %v1936_v33 = vpack.c.bf16 %v1057_v53, %v1056_v50 }
 0x2e9   : > { %1903 = vmatprep.subr.bf16.mxu1 %v1902_v34  ;;  %v930_v34 = vld [vmem:[#allocation3 + $0x10] sm:$0xfc] }
 0x2ea   : > { %v972_v38 = vrot.slane %v930_v34, 2  ;;  %v1491_v34 = vmul.f32 -1.442695, %v2984_v13 }
 0x2ec   : > { %1905 = vmatpush3.bf16.msra.mxu1 %v1904_v39  ;;  %v973_v39 = vrot.slane %v933_v35, 2  ;;  %2041 = vpow2.f32 %v1491_v34 }
 0x2ed   : > { %1907 = vmatprep.subr.bf16.mxu1 %v1906_v40  ;;  %v1939_v40 = vpack.c.bf16 %v1075_v37, %v1074_v36 }
 0x2ee   : > { %v974_v47 = vsel %vm346_vm11, %v972_v38, %v973_v39 }
 0x2f6   : > { %v2042_v35 = vpop.eup %2041 }
 0x2f7   : > { %v903_v36 = vadd.f32 1.0, %v2042_v35 }
 0x2f9   : > { %2043 = vrcp.f32 %v903_v36 }
 0x347   : > { %v3131_v45 = vpop.permute.xlu1 %2033 }
 0x348   : > { %v2036_v48 = vunpack.i.h.bf16 %v3131_v45  ;;  %v2035_v49 = vunpack.i.l.bf16 %v3131_v45 }
 0x34a   : > { %v955_v55 = vsel %vm334_vm10, %v2035_v49, %v2036_v48  ;;  %v977_v56 = vsel %vm334_vm10, %v2724_v57, %v2035_v49  ;;  %v968_v57 = vsel %vm346_vm11, %v966_v51, %v967_v52  ;;  %v956_v46 = vsel %vm334_vm10, %v2036_v48, %v954_v41  ;;  %v1078_v51 = vld [vmem:[%s3326_s2 + $0x320] sm:$0xff]  ;;  %v1079_v52 = vld [vmem:[%s3326_s2 + $0x328] sm:$0xff]  ;;  %v1080_v48 = vld [vmem:[%s3326_s2 + $0x330] sm:$0xff] }
 0x34b   : > { %1241 = vmatprep.mubr.f32.mxu1 %v955_v55  ;;  %v1942_v49 = vpack.c.bf16 %v1077_v44, %v1076_v43  ;;  %v1945_v45 = vpack.c.bf16 %v1079_v52, %v1078_v51 }
 0x34c   : > { %1242 = vmatmul.mubr.f32.vlgmr.msra.gmra.mrb[4].mxu1 %v977_v56  ;;  %v1082_v56 = vld [vmem:[%s3326_s2 + $0x340] sm:$0xff] }
 0x34d   : > { %1909 = vmatpush3.bf16.msra.mxu1 %v1908_v54  ;;  %1311 = vmatprep.mubr.f32.mxu1 %v968_v57  ;;  %v1081_v54 = vld [vmem:[%s3326_s2 + $0x338] sm:$0xff]  ;;  %v1086_v57 = vld [vmem:[%s3326_s2 + $0x360] sm:$0xff] }
 0x34e   : > { %1911 = vmatprep.subr.bf16.mxu1 %v1910_v58  ;;  %v1948_v55 = vpack.c.bf16 %v1081_v54, %v1080_v48  ;;  %v1083_v58 = vld [vmem:[%s3326_s2 + $0x348] sm:$0xff] }
 0x34f   : > { %v1951_v59 = vpack.c.bf16 %v1083_v58, %v1082_v56 }
 0x351   : > { %1913 = vmatpush3.bf16.msra.mxu1 %v1912_v63  ;;  %v1087_v63 = vld [vmem:[%s3326_s2 + $0x368] sm:$0xff] }
 0x352   : > { %1915 = vmatprep.subr.bf16.mxu1 %v1914_v0  ;;  %v1957_v0 = vpack.c.bf16 %v1087_v63, %v1086_v57 }
 0x355   : > { %1917 = vmatpush3.bf16.msra.mxu1 %v1916_v5  ;;  %v1091_v5 = vld [vmem:[%s3326_s2 + $0x388] sm:$0xff] }
 0x356   : > { %1919 = vmatprep.subr.bf16.mxu1 %v1918_v6  ;;  %v1963_v6 = vpack.c.bf16 %v1091_v5, %v1090_v4 }
 0x359   : > { %1921 = vmatpush3.bf16.msra.mxu1 %v1920_v11  ;;  %v1095_v11 = vld [vmem:[%s3326_s2 + $0x3a8] sm:$0xff] }
 0x35a   : > { %1923 = vmatprep.subr.bf16.mxu1 %v1922_v12  ;;  %v1969_v12 = vpack.c.bf16 %v1095_v11, %v1094_v10 }
 0x35d   : > { %1925 = vmatpush3.bf16.msra.mxu1 %v1924_v18  ;;  %v1972_v18 = vpack.c.bf16 %v1097_v15, %v1096_v14 }
 0x35e   : > { %1927 = vmatprep.subr.bf16.mxu1 %v1926_v19  ;;  %v969_v19 = vrot.slane %v929_v16, 2 }
 0x360   : > { %v971_v21 = vsel %vm346_vm11, %v969_v19, %v970_v20 }
 0x361   : > { %1929 = vmatpush3.bf16.msra.mxu1 %v1928_v24 }
 0x362   : > { %1931 = vmatprep.subr.bf16.mxu1 %v1930_v25  ;;  %v1493_v25 = vld [vmem:[%s3328_s4] ss:$0 sm:$0xff] }
 0x365   : > { %1933 = vmatpush3.bf16.msra.mxu1 %v1932_v30 }
 0x366   : > { %1935 = vmatprep.subr.bf16.mxu1 %v1934_v32 }
 0x369   : > { %1937 = vmatpush3.bf16.msra.mxu1 %v1936_v33 }
 0x36a   : > { %1938 = vmatprep.subr.bf16.mxu1 %v2092_v42 }
 0x36c   : > { %1312 = vmatmul.mubr.f32.vlgmr.msra.gmra.mrb[6].mxu1 %v956_v46 }
 0x36d   : > { %1940 = vmatpush1.bf16.msra.mxu1 %v1939_v40  ;;  %1494 = vmatprep.mubr.msk.f32.mxu1 %vm334_vm10, %v974_v47  ;;  %v2044_v40 = vpop.eup %2043 }
 0x36e   : > { %1941 = vmatprep.subr.bf16.mxu1 %v2092_v42  ;;  %v1388_v41 = vsub.f32 1.0, %v2044_v40 }
 0x370   : > { %v1389_v43 = vmul.f32 %v3010_v31, %v1388_v41 }
 0x371   : > { %1943 = vmatpush1.bf16.msra.mxu1 %v1942_v49 }
 0x372   : > { %1944 = vmatprep.subr.bf16.mxu1 %v2092_v42 }
 0x375   : > { %1946 = vmatpush1.bf16.msra.mxu1 %v1945_v45 }
 0x376   : > { %1947 = vmatprep.subr.bf16.mxu1 %v2092_v42 }
 0x379   : > { %1949 = vmatpush1.bf16.msra.mxu1 %v1948_v55 }
 0x37a   : > { %1950 = vmatprep.subr.bf16.mxu1 %v2092_v42 }
 0x37d   : > { %1952 = vmatpush1.bf16.msra.mxu1 %v1951_v59 }
 0x37e   : > { %1953 = vmatprep.subr.bf16.mxu1 %v2092_v42 }
 0x381   : > { %1955 = vmatpush1.bf16.msra.mxu1 %v1954_v62 }
 0x382   : > { %1956 = vmatprep.subr.bf16.mxu1 %v2092_v42 }
 0x385   : > { %1958 = vmatpush1.bf16.msra.mxu1 %v1957_v0 }
 0x386   : > { %1959 = vmatprep.subr.bf16.mxu1 %v2092_v42 }
 0x389   : > { %1961 = vmatpush1.bf16.msra.mxu1 %v1960_v3 }
 0x38a   : > { %1962 = vmatprep.subr.bf16.mxu1 %v2092_v42 }
 0x38d   : > { %1964 = vmatpush1.bf16.msra.mxu1 %v1963_v6 }
 0x38e   : > { %1965 = vmatprep.subr.bf16.mxu1 %v2092_v42 }
 0x391   : > { %1967 = vmatpush1.bf16.msra.mxu1 %v1966_v9 }
 0x392   : > { %1968 = vmatprep.subr.bf16.mxu1 %v2092_v42 }
 0x395   : > { %1970 = vmatpush1.bf16.msra.mxu1 %v1969_v12 }
 0x396   : > { %1971 = vmatprep.subr.bf16.mxu1 %v2092_v42 }
 0x399   : > { %1973 = vmatpush1.bf16.msra.mxu1 %v1972_v18 }
 0x39c   : > { %1382 = vmatmul.mubr.f32.vlgmr.msra.gmra.mrb[8].mxu1 %v971_v21 }
 0x3a2   : > { %v1529_v22 = vpop.f32.mrb[2].mxu1 }
 0x3a3   : > { %v1530_v23 = vpop.f32.mrb[3].mxu1 }
 0x3a4   : > { %v1531_v24 = vadd.f32 %v1530_v23, %v1529_v22 }
 0x3a6   : > { %v1174_v28 = vadd.f32 %v1531_v24, %v1493_v25 }
 0x41f   : > { %v1564_v26 = vpop.f32.mrb[4].mxu1 }
 0x420   : > { %v1565_v27 = vpop.f32.mrb[5].mxu1 }
 0x421   : > { %v1566_v29 = vadd.f32 %v1565_v27, %v1564_v26 }
 0x423   : > { %v1244_v30 = vadd.f32 %v1566_v29, %v1174_v28 }
 0x43f   : > { %v1599_v32 = vpop.f32.mrb[6].mxu1 }
 0x440   : > { %v1600_v50 = vpop.f32.mrb[7].mxu1 }
 0x441   : > { %v1601_v53 = vadd.f32 %v1600_v50, %v1599_v32 }
 0x443   : > { %v1314_v33 = vadd.f32 %v1601_v53, %v1244_v30 }
 0x46f   : > { %v1383_v37 = vpop.f32.mrb[8].mxu1 }
 0x470   : > { %v1384_v38 = vadd.f32 %v1383_v37, %v1314_v33  ;;  %v1385_v39 = vpop.f32.mrb[9].mxu1 }
 0x472   : > { %2045 = vtanh.f32 %v1384_v38 }
 0x47c   : > { %v2046_v42 = vpop.eup %2045 }
 0x47d   : > { %v1390_v44 = vmul.f32 %v2046_v42, %v2044_v40 }
 0x47f   : > { %v1391_v46 = vadd.f32 %v1390_v44, %v1389_v43 }
 0x481   : > { %1392 = vst [vmem:[#allocation2] sm:$0xff] %v1391_v46  ;;  %1393 = vst [vmem:[%s2159_s9] sm:$0xff] %v1391_v46 }
 0x482 PF: > { %s15_s22 = sadd.s32 1, %s2086_s22   ;;  %s3330_s18 = smov %s2078_s20 }
 0x483   : > { %p12_p8 = scmp.ge.s32.totalorder %s15_s22, 10   ;;  %s3331_s19 = smov %s2082_s21 }
 0x484   : > { %s3332_s20 = smov %s3335_s23  ;;  %s3333_s21 = smov %s3339_s24 }
 0x485   :  { %14 = sbr.rel (!%p12_p8) target bundleno = 3 (0x3), region = 74 }

</bundles_post_ra>
